<compile_context>
chip_gen: v5e
topology: v5e:2x2
jax: 0.10.0
libtpu: 0.0.40
codegen_flags: <defaults>
</compile_context>

<pallas_src>
import math

import jax
import jax.numpy as jnp
from jax import lax
from jax.experimental import pallas as pl
from jax.experimental.pallas import tpu as pltpu

# --- small-but-structurally-faithful ViT config (vit_small scaled down) -------
IMG = 32            # image size      (224 in the real model)
PATCH = 16          # patch size      (16)
IN_CHANS = 3        # input channels  (3)
EMBED_DIM = 64      # embed dim       (384)
DEPTH = 2           # blocks          (12)
NUM_HEADS = 4       # heads           (6)
MLP_RATIO = 4       # mlp ratio       (4)
OUT_FEATURES = 2    # replaced head   (2)
HEAD_DIM = EMBED_DIM // NUM_HEADS
HIDDEN = EMBED_DIM * MLP_RATIO
GRIDP = IMG // PATCH
NUM_PATCHES = GRIDP * GRIDP
NUM_TOKENS = NUM_PATCHES + 1                       # +1 cls token
TOKENS_PAD = ((NUM_TOKENS + 7) // 8) * 8           # pad token axis to 8 sublanes
PATCH_FEATS = IN_CHANS * PATCH * PATCH
EPS = 1e-6                                         # timm ViT LayerNorm eps
SCALE = HEAD_DIM ** -0.5
NEG_BIG = -1e30                                    # additive mask for pad keys

# bf16 operands on the MXU (f32 accumulation); flip to jnp.float32 for exact
# torch-f32 matmul semantics.  LN / softmax / GELU are always f32 (v5e has no
# bf16 VPU/EUP path anyway).
MM_DTYPE = jnp.bfloat16

# Images per fused-block grid step.  Chosen so the parallel grid axis still has
# >= 4 steps at B=8 (keeps both v7x TensorCores busy) while the per-step slab
# (BATCH_BLOCK*TOKENS_PAD rows) fills whole sublane tiles.  At real vit_small
# scale size this against VMEM (64 MiB physical on v7x, 128 MiB on v5e/v6e).
BATCH_BLOCK = 2


# ------------------------------ in-kernel helpers ------------------------------
def _erf(x):
    # Abramowitz & Stegun 7.1.26 polynomial erf (max abs err ~1.5e-7 ~ f32 eps),
    # so erf-based torch.nn.GELU semantics are preserved.
    a1, a2, a3, a4, a5 = 0.254829592, -0.284496736, 1.421413741, -1.453152027, 1.061405429
    p = 0.3275911
    ax = jnp.abs(x)
    t = 1.0 / (1.0 + p * ax)
    poly = ((((a5 * t + a4) * t + a3) * t + a2) * t + a1) * t
    y = 1.0 - poly * jnp.exp(-ax * ax)
    return jnp.where(x >= 0.0, y, -y)


def _gelu_exact(x):
    return 0.5 * x * (1.0 + _erf(x * (1.0 / math.sqrt(2.0))))


def _layernorm(x, g, b):
    # single reduction pass: sum and sum-of-squares (biased var, like torch LN)
    d = x.shape[-1]
    s1 = jnp.sum(x, axis=-1, keepdims=True)
    s2 = jnp.sum(x * x, axis=-1, keepdims=True)
    mean = s1 * (1.0 / d)
    var = jnp.maximum(s2 * (1.0 / d) - mean * mean, 0.0)
    inv = lax.rsqrt(var + EPS)
    return (x - mean) * inv * g + b


def _softmax_rows(s, approx):
    s = s - jnp.max(s, axis=-1, keepdims=True)
    p = jnp.exp(s)
    return p * pl.reciprocal(jnp.sum(p, axis=-1, keepdims=True), approx=approx)


# -------------------------------- Pallas kernels --------------------------------
def _embed_kernel(p_ref, w_ref, add_ref, o_ref):
    # patches are pre-padded per image to TOKENS_PAD rows (row 0 = zero cls slot,
    # rows > NUM_PATCHES = zero pad), so this is just matmul + per-token additive
    # (conv bias + pos embed + cls) and ONE full-tile store.
    tok = jnp.dot(p_ref[...].astype(MM_DTYPE), w_ref[...],
                  preferred_element_type=jnp.float32)           # (rows, D)
    rows = tok.shape[0]
    tok = tok.reshape(rows // TOKENS_PAD, TOKENS_PAD, EMBED_DIM) + add_ref[...]
    o_ref[...] = tok.reshape(rows, EMBED_DIM)


def patch_embed(patches, w, addend, batch):
    nchunk = batch // BATCH_BLOCK
    rows_blk = BATCH_BLOCK * TOKENS_PAD
    return pl.pallas_call(
        _embed_kernel,
        out_shape=jax.ShapeDtypeStruct((batch * TOKENS_PAD, EMBED_DIM), jnp.float32),
        grid=(nchunk,),
        in_specs=[
            pl.BlockSpec((rows_blk, PATCH_FEATS), lambda i: (i, 0)),
            pl.BlockSpec((PATCH_FEATS, EMBED_DIM), lambda i: (0, 0)),
            pl.BlockSpec((TOKENS_PAD, EMBED_DIM), lambda i: (0, 0)),
        ],
        out_specs=pl.BlockSpec((rows_blk, EMBED_DIM), lambda i: (i, 0)),
        compiler_params=pltpu.CompilerParams(dimension_semantics=("parallel",)),
    )(patches, w, addend)


def _blocks_kernel(x_ref, ln1g_ref, ln1b_ref, qkvw_ref, qkvb_ref,
                   projw_ref, projb_ref, ln2g_ref, ln2b_ref,
                   fc1w_ref, fc1b_ref, fc2w_ref, fc2b_ref,
                   cls_ref, resid_ref):
    d = pl.program_id(1)

    # residual stream lives in VMEM scratch across all DEPTH steps of this chunk
    @pl.when(d == 0)
    def _():
        resid_ref[...] = x_ref[...]

    x = resid_ref[...]                                         # (R, D) f32 slab
    rows = x.shape[0]
    bb = rows // TOKENS_PAD

    # --- attention branch: x + proj(attn(LN1(x))) -------------------------------
    h1 = _layernorm(x, ln1g_ref[0], ln1b_ref[0])
    qkv = jnp.dot(h1.astype(MM_DTYPE), qkvw_ref[0],
                  preferred_element_type=jnp.float32) + qkvb_ref[0]   # (R, 3D)

    # One-time reorg into a single (H*bb, Tp, hd) batch dim, then head-batched
    # einsums (no per-head matmuls, no per-head accumulator adds).
    def split_heads(off, scale=None):
        parts = []
        for h in range(NUM_HEADS):
            lo = off + h * HEAD_DIM
            t = qkv[:, lo:lo + HEAD_DIM]
            if scale is not None:
                t = t * scale
            parts.append(t.reshape(bb, TOKENS_PAD, HEAD_DIM))
        return jnp.concatenate(parts, axis=0)                  # (H*bb, Tp, hd)

    qb = split_heads(0, SCALE).astype(MM_DTYPE)
    kb = split_heads(EMBED_DIM).astype(MM_DTYPE)
    vb = split_heads(2 * EMBED_DIM).astype(MM_DTYPE)

    s = jnp.einsum('bqd,bkd->bqk', qb, kb,
                   preferred_element_type=jnp.float32)         # (H*bb, Tp, Tp)
    if TOKENS_PAD > NUM_TOKENS:                                # mask padded key tokens
        kidx = lax.broadcasted_iota(jnp.int32, s.shape, 2)
        s = jnp.where(kidx < NUM_TOKENS, s, NEG_BIG)
    p = _softmax_rows(s, approx=True)
    ob = jnp.einsum('bqk,bkd->bqd', p.astype(MM_DTYPE), vb,
                    preferred_element_type=jnp.float32)        # (H*bb, Tp, hd)

    o_slab = jnp.concatenate(
        [ob[h * bb:(h + 1) * bb].reshape(rows, HEAD_DIM) for h in range(NUM_HEADS)],
        axis=-1)                                               # (R, D)
    attn = jnp.dot(o_slab.astype(MM_DTYPE), projw_ref[0],
                   preferred_element_type=jnp.float32) + projb_ref[0]
    x1 = x + attn

    # --- MLP branch: x1 + fc2(GELU(fc1(LN2(x1)))) --------------------------------
    h2 = _layernorm(x1, ln2g_ref[0], ln2b_ref[0])
    y = jnp.dot(h2.astype(MM_DTYPE), fc1w_ref[0],
                preferred_element_type=jnp.float32) + fc1b_ref[0]
    y = _gelu_exact(y)
    y = jnp.dot(y.astype(MM_DTYPE), fc2w_ref[0],
                preferred_element_type=jnp.float32) + fc2b_ref[0]
    out = x1 + y
    resid_ref[...] = out

    # after the last block, emit only the cls rows (all the head needs)
    @pl.when(d == pl.num_programs(1) - 1)
    def _():
        cls_ref[0] = out.reshape(bb, TOKENS_PAD, EMBED_DIM)[:, 0, :]


def transformer_blocks(x_tok, params, batch):
    nchunk = batch // BATCH_BLOCK
    rows_blk = BATCH_BLOCK * TOKENS_PAD
    D = EMBED_DIM
    wspec = lambda m, n: pl.BlockSpec((1, m, n), lambda b, d: (d, 0, 0))

    cls = pl.pallas_call(
        _blocks_kernel,
        out_shape=jax.ShapeDtypeStruct((nchunk, BATCH_BLOCK, D), jnp.float32),
        grid=(nchunk, DEPTH),
        in_specs=[
            pl.BlockSpec((rows_blk, D), lambda b, d: (b, 0)),   # token slab (read @ d==0)
            wspec(1, D), wspec(1, D),                           # ln1 g, b
            wspec(D, 3 * D), wspec(1, 3 * D),                   # qkv w, b
            wspec(D, D), wspec(1, D),                           # proj w, b
            wspec(1, D), wspec(1, D),                           # ln2 g, b
            wspec(D, HIDDEN), wspec(1, HIDDEN),                 # fc1 w, b
            wspec(HIDDEN, D), wspec(1, D),                      # fc2 w, b
        ],
        out_specs=pl.BlockSpec((1, BATCH_BLOCK, D), lambda b, d: (b, 0, 0)),
        scratch_shapes=[pltpu.VMEM((rows_blk, D), jnp.float32)],
        compiler_params=pltpu.CompilerParams(
            dimension_semantics=("parallel", "arbitrary"),
            vmem_limit_bytes=48 * 1024 * 1024),                 # fits v7x 64 MiB physical
    )(x_tok,
      params["ln1_g"], params["ln1_b"],
      params["qkv_w"].astype(MM_DTYPE), params["qkv_b"],
      params["proj_w"].astype(MM_DTYPE), params["proj_b"],
      params["ln2_g"], params["ln2_b"],
      params["fc1_w"].astype(MM_DTYPE), params["fc1_b"],
      params["fc2_w"].astype(MM_DTYPE), params["fc2_b"])
    return cls.reshape(batch, D)


def _head_kernel(cls_ref, g_ref, b_ref, w_ref, o_ref):
    # final LayerNorm (cls token only; LN is per-token), Linear(no bias), Softmax.
    # Kept f32: the head is the only trainable part of the torch module.
    cls = _layernorm(cls_ref[...], g_ref[...], b_ref[...])
    y = jnp.dot(cls, w_ref[...], preferred_element_type=jnp.float32)
    y = y - jnp.max(y, axis=-1, keepdims=True)
    e = jnp.exp(y)
    o_ref[...] = e * pl.reciprocal(jnp.sum(e, axis=-1, keepdims=True))


def head_softmax(cls, g, b, w):
    B, D = cls.shape
    N = w.shape[1]
    return pl.pallas_call(
        _head_kernel,
        out_shape=jax.ShapeDtypeStruct((B, N), jnp.float32),
        grid=(1,),
        in_specs=[
            pl.BlockSpec((B, D), lambda i: (0, 0)),
            pl.BlockSpec((1, D), lambda i: (0, 0)),
            pl.BlockSpec((1, D), lambda i: (0, 0)),
            pl.BlockSpec((D, N), lambda i: (0, 0)),
        ],
        out_specs=pl.BlockSpec((B, N), lambda i: (0, 0)),
    )(cls, g, b, w)


# -------------------------------- model (glue) ----------------------------------
def visformer_forward(x, params):
    B = x.shape[0]
    assert B % BATCH_BLOCK == 0, "batch must be a multiple of BATCH_BLOCK"

    # Patch-embed Conv2d(k=16, s=16) == unfold + matmul.  Unfold order (C, P, P)
    # matches conv_weight.reshape(D, C*P*P).T.  Token axis is padded to TOKENS_PAD
    # with a zero row 0 (cls slot) and zero tail rows, so the embed kernel is a
    # single matmul + additive.  This is cheap one-time XLA layout plumbing.
    p = x.reshape(B, IN_CHANS, GRIDP, PATCH, GRIDP, PATCH)
    p = p.transpose(0, 2, 4, 1, 3, 5).reshape(B, NUM_PATCHES, PATCH_FEATS)
    p = jnp.pad(p, ((0, 0), (1, TOKENS_PAD - 1 - NUM_PATCHES), (0, 0)))
    patches = p.reshape(B * TOKENS_PAD, PATCH_FEATS)

    pos = params["pos"][0]                                      # (T, D)
    addend = jnp.concatenate([
        params["cls"] + pos[0:1],                               # cls slot: cls + pos[0]
        pos[1:] + params["patch_b"],                            # patch rows: bias + pos
        jnp.zeros((TOKENS_PAD - NUM_TOKENS, EMBED_DIM), jnp.float32),  # pad rows -> 0
    ], axis=0)                                                  # (TOKENS_PAD, D)

    x_tok = patch_embed(patches, params["patch_w"].astype(MM_DTYPE), addend, B)
    cls = transformer_blocks(x_tok, params, B)                  # (B, D)
    return head_softmax(cls, params["norm_g"], params["norm_b"], params["head_w"])


# ------------------------- pure-JAX reference (for checking) ---------------------
def visformer_reference(x, params):
    B = x.shape[0]
    p = x.reshape(B, IN_CHANS, GRIDP, PATCH, GRIDP, PATCH)
    p = p.transpose(0, 2, 4, 1, 3, 5).reshape(B, NUM_PATCHES, PATCH_FEATS)
    tok = p @ params["patch_w"] + params["patch_b"]
    cls = jnp.broadcast_to(params["cls"], (B, 1, EMBED_DIM))
    xt = jnp.concatenate([cls, tok], axis=1) + params["pos"]

    def ln(v, g, b):
        m = v.mean(-1, keepdims=True)
        va = v.var(-1, keepdims=True)
        return (v - m) / jnp.sqrt(va + EPS) * g + b

    for d in range(DEPTH):
        h = ln(xt, params["ln1_g"][d], params["ln1_b"][d])
        qkv = h @ params["qkv_w"][d] + params["qkv_b"][d]
        q, k, v = jnp.split(qkv, 3, axis=-1)
        q = q.reshape(B, NUM_TOKENS, NUM_HEADS, HEAD_DIM).transpose(0, 2, 1, 3) * SCALE
        k = k.reshape(B, NUM_TOKENS, NUM_HEADS, HEAD_DIM).transpose(0, 2, 1, 3)
        v = v.reshape(B, NUM_TOKENS, NUM_HEADS, HEAD_DIM).transpose(0, 2, 1, 3)
        a = jax.nn.softmax(q @ k.transpose(0, 1, 3, 2), axis=-1)
        o = (a @ v).transpose(0, 2, 1, 3).reshape(B, NUM_TOKENS, EMBED_DIM)
        xt = xt + o @ params["proj_w"][d] + params["proj_b"][d]
        h2 = ln(xt, params["ln2_g"][d], params["ln2_b"][d])
        y = jax.nn.gelu(h2 @ params["fc1_w"][d] + params["fc1_b"][d], approximate=False)
        xt = xt + y @ params["fc2_w"][d] + params["fc2_b"][d]

    c = ln(xt[:, 0], params["norm_g"], params["norm_b"])
    return jax.nn.softmax(c @ params["head_w"], axis=-1)


# ------------------------ deterministic synthetic params -------------------------
# TODO(synk): the real module loads pretrained augreg_in1k weights via timm; here
# they are deterministically initialized in-script (shapes match the architecture).
def init_params(key):
    ks = jax.random.split(key, 8)
    n = lambda k, s: (0.02 * jax.random.normal(k, s)).astype(jnp.float32)
    z = lambda s: jnp.zeros(s, jnp.float32)
    o = lambda s: jnp.ones(s, jnp.float32)
    D, D3, HID = EMBED_DIM, 3 * EMBED_DIM, HIDDEN
    return {
        "patch_w": n(ks[0], (PATCH_FEATS, D)),
        "patch_b": z((1, D)),
        "cls":     n(ks[1], (1, D)),
        "pos":     n(ks[2], (1, NUM_TOKENS, D)),
        "norm_g":  o((1, D)),
        "norm_b":  z((1, D)),
        "head_w":  n(ks[3], (D, OUT_FEATURES)),
        # per-block weights, stacked along a leading depth axis (streamed by the
        # fused kernel's depth grid coordinate)
        "ln1_g": o((DEPTH, 1, D)), "ln1_b": z((DEPTH, 1, D)),
        "qkv_w": n(ks[4], (DEPTH, D, D3)), "qkv_b": z((DEPTH, 1, D3)),
        "proj_w": n(ks[5], (DEPTH, D, D)), "proj_b": z((DEPTH, 1, D)),
        "ln2_g": o((DEPTH, 1, D)), "ln2_b": z((DEPTH, 1, D)),
        "fc1_w": n(ks[6], (DEPTH, D, HID)), "fc1_b": z((DEPTH, 1, HID)),
        "fc2_w": n(ks[7], (DEPTH, HID, D)), "fc2_b": z((DEPTH, 1, D)),
    }


if __name__ == "__main__":
    key = jax.random.PRNGKey(0)
    kx, kp = jax.random.split(key)
    B = 8  # gives the fused kernel's parallel (batch-chunk) axis 4 steps at BATCH_BLOCK=2
    x = jax.random.normal(kx, (B, IN_CHANS, IMG, IMG), dtype=jnp.float32)   # NCHW
    params = init_params(kp)

    fwd = jax.jit(visformer_forward)
    out = jax.block_until_ready(fwd(x, params))

    assert out.shape == (B, OUT_FEATURES)
    assert bool(jnp.all(jnp.isfinite(out)))
    # softmax rows must sum to 1
    assert bool(jnp.allclose(jnp.sum(out, axis=1), 1.0, atol=1e-5))
    # numerics vs a pure-JAX f32 reference (bf16 matmul operands + approx softmax
    # reciprocal are the accepted deviations)
    ref = visformer_reference(x, params)
    assert bool(jnp.allclose(out, ref, atol=2e-2)), (out, ref)
    print("KERNEL_OK")
</pallas_src>

<mosaic_0001>
module attributes {stable_mosaic.version = 11 : i64} {
  func.func @_embed_kernel(%arg0: i32, %arg1: memref<16x768xf32, #tpu.memory_space<vmem>>, %arg2: memref<768x64xbf16, #tpu.memory_space<vmem>>, %arg3: memref<8x64xf32, #tpu.memory_space<vmem>>, %arg4: memref<16x64xf32, #tpu.memory_space<vmem>>) attributes {dimension_semantics = [#tpu.dimension_semantics<parallel>], iteration_bounds = array<i64: 4>, scalar_prefetch = 0 : i64, scratch_operands = 0 : i64, tpu.core_type = #tpu.core_type<tc>, window_params = [{transform_indices = @transform_0, window_bounds = array<i64: 16, 768>}, {pipeline_mode = #tpu.pipeline_mode<synchronous>, transform_indices = @transform_1, window_bounds = array<i64: 768, 64>}, {pipeline_mode = #tpu.pipeline_mode<synchronous>, transform_indices = @transform_2, window_bounds = array<i64: 8, 64>}, {transform_indices = @transform_3, window_bounds = array<i64: 16, 64>}]} {
    %c0 = arith.constant 0 : index
    %c0_0 = arith.constant 0 : index
    %0 = vector.load %arg1[%c0, %c0_0] : memref<16x768xf32, #tpu.memory_space<vmem>>, vector<16x768xf32>
    %1 = arith.truncf %0 : vector<16x768xf32> to vector<16x768xbf16>
    %c0_1 = arith.constant 0 : index
    %c0_2 = arith.constant 0 : index
    %2 = vector.load %arg2[%c0_1, %c0_2] : memref<768x64xbf16, #tpu.memory_space<vmem>>, vector<768x64xbf16>
    %cst = arith.constant dense<0.000000e+00> : vector<16x64xf32>
    %3 = tpu.matmul %1, %2, %cst {dimension_numbers = #tpu.dot_dimension_numbers<[1], [0], [0], [1], [0, 0, 1, 1], [], []>} : vector<16x768xbf16>, vector<768x64xbf16>, vector<16x64xf32> -> vector<16x64xf32>
    %4 = vector.shape_cast %3 : vector<16x64xf32> to vector<2x8x64xf32>
    %c0_3 = arith.constant 0 : index
    %c0_4 = arith.constant 0 : index
    %5 = vector.load %arg3[%c0_3, %c0_4] : memref<8x64xf32, #tpu.memory_space<vmem>>, vector<8x64xf32>
    %6 = vector.shape_cast %5 : vector<8x64xf32> to vector<1x8x64xf32>
    %7 = vector.broadcast %6 : vector<1x8x64xf32> to vector<2x8x64xf32>
    %8 = arith.addf %4, %7 : vector<2x8x64xf32>
    %9 = vector.shape_cast %8 : vector<2x8x64xf32> to vector<16x64xf32>
    %c0_5 = arith.constant 0 : index
    %c0_6 = arith.constant 0 : index
    %10 = vector.load %arg4[%c0_5, %c0_6] : memref<16x64xf32, #tpu.memory_space<vmem>>, vector<16x64xf32>
    tpu.vector_store %arg4[%c0_5, %c0_6], %9 {strides = array<i32>} : memref<16x64xf32, #tpu.memory_space<vmem>>, vector<16x64xf32>,
    return
  }
  func.func @transform_0(%arg0: i32) -> (i32, i32) {
    %c0_i32 = arith.constant 0 : i32
    %c0_i32_0 = arith.constant 0 : i32
    return %arg0, %c0_i32 : i32, i32
  }
  func.func @transform_1(%arg0: i32) -> (i32, i32) {
    %c0_i32 = arith.constant 0 : i32
    %c0_i32_0 = arith.constant 0 : i32
    %c0_i32_1 = arith.constant 0 : i32
    return %c0_i32, %c0_i32_0 : i32, i32
  }
  func.func @transform_2(%arg0: i32) -> (i32, i32) {
    %c0_i32 = arith.constant 0 : i32
    %c0_i32_0 = arith.constant 0 : i32
    %c0_i32_1 = arith.constant 0 : i32
    return %c0_i32, %c0_i32_0 : i32, i32
  }
  func.func @transform_3(%arg0: i32) -> (i32, i32) {
    %c0_i32 = arith.constant 0 : i32
    %c0_i32_0 = arith.constant 0 : i32
    return %arg0, %c0_i32 : i32, i32
  }
}

module attributes {stable_mosaic.version = 11 : i64} {
  func.func @_head_kernel(%arg0: i32, %arg1: memref<8x64xf32, #tpu.memory_space<vmem>>, %arg2: memref<1x64xf32, #tpu.memory_space<vmem>>, %arg3: memref<1x64xf32, #tpu.memory_space<vmem>>, %arg4: memref<64x2xf32, #tpu.memory_space<vmem>>, %arg5: memref<8x2xf32, #tpu.memory_space<vmem>>) attributes {dimension_semantics = [#tpu.dimension_semantics<arbitrary>], iteration_bounds = array<i64: 1>, scalar_prefetch = 0 : i64, scratch_operands = 0 : i64, tpu.core_type = #tpu.core_type<tc>, window_params = [{pipeline_mode = #tpu.pipeline_mode<synchronous>, transform_indices = @transform_0, window_bounds = array<i64: 8, 64>}, {pipeline_mode = #tpu.pipeline_mode<synchronous>, transform_indices = @transform_1, window_bounds = array<i64: 1, 64>}, {pipeline_mode = #tpu.pipeline_mode<synchronous>, transform_indices = @transform_2, window_bounds = array<i64: 1, 64>}, {pipeline_mode = #tpu.pipeline_mode<synchronous>, transform_indices = @transform_3, window_bounds = array<i64: 64, 2>}, {pipeline_mode = #tpu.pipeline_mode<synchronous>, transform_indices = @transform_4, window_bounds = array<i64: 8, 2>}]} {
    %c0 = arith.constant 0 : index
    %c0_0 = arith.constant 0 : index
    %0 = vector.load %arg1[%c0, %c0_0] : memref<8x64xf32, #tpu.memory_space<vmem>>, vector<8x64xf32>
    %c0_1 = arith.constant 0 : index
    %c0_2 = arith.constant 0 : index
    %1 = vector.load %arg2[%c0_1, %c0_2] : memref<1x64xf32, #tpu.memory_space<vmem>>, vector<1x64xf32>
    %c0_3 = arith.constant 0 : index
    %c0_4 = arith.constant 0 : index
    %2 = vector.load %arg3[%c0_3, %c0_4] : memref<1x64xf32, #tpu.memory_space<vmem>>, vector<1x64xf32>
    %cst = arith.constant dense<0.000000e+00> : vector<8xf32>
    %3 = vector.multi_reduction <add>, %0, %cst [1] : vector<8x64xf32> to vector<8xf32>
    %4 = vector.shape_cast %3 : vector<8xf32> to vector<8x1xf32>
    %5 = arith.mulf %0, %0 : vector<8x64xf32>
    %cst_5 = arith.constant dense<0.000000e+00> : vector<8xf32>
    %6 = vector.multi_reduction <add>, %5, %cst_5 [1] : vector<8x64xf32> to vector<8xf32>
    %7 = vector.shape_cast %6 : vector<8xf32> to vector<8x1xf32>
    %cst_6 = arith.constant 1.562500e-02 : f32
    %8 = vector.broadcast %cst_6 : f32 to vector<8x1xf32>
    %9 = arith.mulf %4, %8 : vector<8x1xf32>
    %cst_7 = arith.constant 1.562500e-02 : f32
    %10 = vector.broadcast %cst_7 : f32 to vector<8x1xf32>
    %11 = arith.mulf %7, %10 : vector<8x1xf32>
    %12 = arith.mulf %9, %9 : vector<8x1xf32>
    %13 = arith.subf %11, %12 : vector<8x1xf32>
    %cst_8 = arith.constant 0.000000e+00 : f32
    %14 = vector.broadcast %cst_8 : f32 to vector<8x1xf32>
    %15 = arith.maximumf %13, %14 : vector<8x1xf32>
    %cst_9 = arith.constant 9.99999997E-7 : f32
    %16 = vector.broadcast %cst_9 : f32 to vector<8x1xf32>
    %17 = arith.addf %15, %16 : vector<8x1xf32>
    %18 = math.rsqrt %17 : vector<8x1xf32>
    %19 = vector.broadcast %9 : vector<8x1xf32> to vector<8x64xf32>
    %20 = arith.subf %0, %19 : vector<8x64xf32>
    %21 = vector.broadcast %18 : vector<8x1xf32> to vector<8x64xf32>
    %22 = arith.mulf %20, %21 : vector<8x64xf32>
    %23 = vector.broadcast %1 : vector<1x64xf32> to vector<8x64xf32>
    %24 = arith.mulf %22, %23 : vector<8x64xf32>
    %25 = vector.broadcast %2 : vector<1x64xf32> to vector<8x64xf32>
    %26 = arith.addf %24, %25 : vector<8x64xf32>
    %c0_10 = arith.constant 0 : index
    %c0_11 = arith.constant 0 : index
    %27 = vector.load %arg4[%c0_10, %c0_11] : memref<64x2xf32, #tpu.memory_space<vmem>>, vector<64x2xf32>
    %cst_12 = arith.constant dense<0.000000e+00> : vector<8x2xf32>
    %28 = tpu.matmul %26, %27, %cst_12 {dimension_numbers = #tpu.dot_dimension_numbers<[1], [0], [0], [1], [0, 0, 1, 1], [], []>} : vector<8x64xf32>, vector<64x2xf32>, vector<8x2xf32> -> vector<8x2xf32>
    %cst_13 = arith.constant dense<0xFF800000> : vector<8xf32>
    %29 = vector.multi_reduction <maximumf>, %28, %cst_13 [1] : vector<8x2xf32> to vector<8xf32>
    %30 = vector.shape_cast %29 : vector<8xf32> to vector<8x1xf32>
    %31 = vector.broadcast %30 : vector<8x1xf32> to vector<8x2xf32>
    %32 = arith.subf %28, %31 : vector<8x2xf32>
    %33 = math.exp %32 : vector<8x2xf32>
    %cst_14 = arith.constant dense<0.000000e+00> : vector<8xf32>
    %34 = vector.multi_reduction <add>, %33, %cst_14 [1] : vector<8x2xf32> to vector<8xf32>
    %35 = vector.shape_cast %34 : vector<8xf32> to vector<8x1xf32>
    %36 = tpu.reciprocal %35 : vector<8x1xf32> -> vector<8x1xf32>
    %37 = vector.broadcast %36 : vector<8x1xf32> to vector<8x2xf32>
    %38 = arith.mulf %33, %37 : vector<8x2xf32>
    %c0_15 = arith.constant 0 : index
    %c0_16 = arith.constant 0 : index
    %39 = vector.load %arg5[%c0_15, %c0_16] : memref<8x2xf32, #tpu.memory_space<vmem>>, vector<8x2xf32>
    tpu.vector_store %arg5[%c0_15, %c0_16], %38 {strides = array<i32>} : memref<8x2xf32, #tpu.memory_space<vmem>>, vector<8x2xf32>,
    return
  }
  func.func @transform_0(%arg0: i32) -> (i32, i32) {
    %c0_i32 = arith.constant 0 : i32
    %c0_i32_0 = arith.constant 0 : i32
    %c0_i32_1 = arith.constant 0 : i32
    return %c0_i32, %c0_i32_0 : i32, i32
  }
  func.func @transform_1(%arg0: i32) -> (i32, i32) {
    %c0_i32 = arith.constant 0 : i32
    %c0_i32_0 = arith.constant 0 : i32
    %c0_i32_1 = arith.constant 0 : i32
    return %c0_i32, %c0_i32_0 : i32, i32
  }
  func.func @transform_2(%arg0: i32) -> (i32, i32) {
    %c0_i32 = arith.constant 0 : i32
    %c0_i32_0 = arith.constant 0 : i32
    %c0_i32_1 = arith.constant 0 : i32
    return %c0_i32, %c0_i32_0 : i32, i32
  }
  func.func @transform_3(%arg0: i32) -> (i32, i32) {
    %c0_i32 = arith.constant 0 : i32
    %c0_i32_0 = arith.constant 0 : i32
    %c0_i32_1 = arith.constant 0 : i32
    return %c0_i32, %c0_i32_0 : i32, i32
  }
  func.func @transform_4(%arg0: i32) -> (i32, i32) {
    %c0_i32 = arith.constant 0 : i32
    %c0_i32_0 = arith.constant 0 : i32
    %c0_i32_1 = arith.constant 0 : i32
    return %c0_i32, %c0_i32_0 : i32, i32
  }
}

module attributes {stable_mosaic.version = 11 : i64} {
  func.func @_blocks_kernel(%arg0: i32, %arg1: i32, %arg2: memref<16x64xf32, #tpu.memory_space<vmem>>, %arg3: memref<1x1x64xf32, #tpu.memory_space<vmem>>, %arg4: memref<1x1x64xf32, #tpu.memory_space<vmem>>, %arg5: memref<1x64x192xbf16, #tpu.memory_space<vmem>>, %arg6: memref<1x1x192xf32, #tpu.memory_space<vmem>>, %arg7: memref<1x64x64xbf16, #tpu.memory_space<vmem>>, %arg8: memref<1x1x64xf32, #tpu.memory_space<vmem>>, %arg9: memref<1x1x64xf32, #tpu.memory_space<vmem>>, %arg10: memref<1x1x64xf32, #tpu.memory_space<vmem>>, %arg11: memref<1x64x256xbf16, #tpu.memory_space<vmem>>, %arg12: memref<1x1x256xf32, #tpu.memory_space<vmem>>, %arg13: memref<1x256x64xbf16, #tpu.memory_space<vmem>>, %arg14: memref<1x1x64xf32, #tpu.memory_space<vmem>>, %arg15: memref<1x2x64xf32, #tpu.memory_space<vmem>>, %arg16: memref<16x64xf32, #tpu.memory_space<vmem>>) attributes {dimension_semantics = [#tpu.dimension_semantics<parallel>, #tpu.dimension_semantics<arbitrary>], iteration_bounds = array<i64: 4, 2>, scalar_prefetch = 0 : i64, scratch_operands = 1 : i64, tpu.core_type = #tpu.core_type<tc>, window_params = [{transform_indices = @transform_0, window_bounds = array<i64: 16, 64>}, {transform_indices = @transform_1, window_bounds = array<i64: 1, 1, 64>}, {transform_indices = @transform_2, window_bounds = array<i64: 1, 1, 64>}, {transform_indices = @transform_3, window_bounds = array<i64: 1, 64, 192>}, {transform_indices = @transform_4, window_bounds = array<i64: 1, 1, 192>}, {transform_indices = @transform_5, window_bounds = array<i64: 1, 64, 64>}, {transform_indices = @transform_6, window_bounds = array<i64: 1, 1, 64>}, {transform_indices = @transform_7, window_bounds = array<i64: 1, 1, 64>}, {transform_indices = @transform_8, window_bounds = array<i64: 1, 1, 64>}, {transform_indices = @transform_9, window_bounds = array<i64: 1, 64, 256>}, {transform_indices = @transform_10, window_bounds = array<i64: 1, 1, 256>}, {transform_indices = @transform_11, window_bounds = array<i64: 1, 256, 64>}, {transform_indices = @transform_12, window_bounds = array<i64: 1, 1, 64>}, {transform_indices = @transform_13, window_bounds = array<i64: 1, 2, 64>}]} {
    %c0_i32 = arith.constant 0 : i32
    %0 = arith.cmpi eq, %arg1, %c0_i32 : i32
    %1 = arith.extui %0 : i1 to i32
    %c0_i32_0 = arith.constant 0 : i32
    %2 = arith.cmpi ne, %1, %c0_i32_0 : i32
    scf.if %2 {
      %c0_80 = arith.constant 0 : index
      %c0_81 = arith.constant 0 : index
      %203 = vector.load %arg2[%c0_80, %c0_81] : memref<16x64xf32, #tpu.memory_space<vmem>>, vector<16x64xf32>
      %c0_82 = arith.constant 0 : index
      %c0_83 = arith.constant 0 : index
      %204 = vector.load %arg16[%c0_82, %c0_83] : memref<16x64xf32, #tpu.memory_space<vmem>>, vector<16x64xf32>
      tpu.vector_store %arg16[%c0_82, %c0_83], %203 {strides = array<i32>} : memref<16x64xf32, #tpu.memory_space<vmem>>, vector<16x64xf32>,
    } else {
    }
    %c0 = arith.constant 0 : index
    %c0_1 = arith.constant 0 : index
    %3 = vector.load %arg16[%c0, %c0_1] : memref<16x64xf32, #tpu.memory_space<vmem>>, vector<16x64xf32>
    %c0_2 = arith.constant 0 : index
    %c0_3 = arith.constant 0 : index
    %c0_4 = arith.constant 0 : index
    %4 = vector.load %arg3[%c0_2, %c0_3, %c0_4] : memref<1x1x64xf32, #tpu.memory_space<vmem>>, vector<1x1x64xf32>
    %5 = vector.shape_cast %4 : vector<1x1x64xf32> to vector<1x64xf32>
    %c0_5 = arith.constant 0 : index
    %c0_6 = arith.constant 0 : index
    %c0_7 = arith.constant 0 : index
    %6 = vector.load %arg4[%c0_5, %c0_6, %c0_7] : memref<1x1x64xf32, #tpu.memory_space<vmem>>, vector<1x1x64xf32>
    %7 = vector.shape_cast %6 : vector<1x1x64xf32> to vector<1x64xf32>
    %cst = arith.constant dense<0.000000e+00> : vector<16xf32>
    %8 = vector.multi_reduction <add>, %3, %cst [1] : vector<16x64xf32> to vector<16xf32>
    %9 = vector.shape_cast %8 : vector<16xf32> to vector<16x1xf32>
    %10 = arith.mulf %3, %3 : vector<16x64xf32>
    %cst_8 = arith.constant dense<0.000000e+00> : vector<16xf32>
    %11 = vector.multi_reduction <add>, %10, %cst_8 [1] : vector<16x64xf32> to vector<16xf32>
    %12 = vector.shape_cast %11 : vector<16xf32> to vector<16x1xf32>
    %cst_9 = arith.constant 1.562500e-02 : f32
    %13 = vector.broadcast %cst_9 : f32 to vector<16x1xf32>
    %14 = arith.mulf %9, %13 : vector<16x1xf32>
    %cst_10 = arith.constant 1.562500e-02 : f32
    %15 = vector.broadcast %cst_10 : f32 to vector<16x1xf32>
    %16 = arith.mulf %12, %15 : vector<16x1xf32>
    %17 = arith.mulf %14, %14 : vector<16x1xf32>
    %18 = arith.subf %16, %17 : vector<16x1xf32>
    %cst_11 = arith.constant 0.000000e+00 : f32
    %19 = vector.broadcast %cst_11 : f32 to vector<16x1xf32>
    %20 = arith.maximumf %18, %19 : vector<16x1xf32>
    %cst_12 = arith.constant 9.99999997E-7 : f32
    %21 = vector.broadcast %cst_12 : f32 to vector<16x1xf32>
    %22 = arith.addf %20, %21 : vector<16x1xf32>
    %23 = math.rsqrt %22 : vector<16x1xf32>
    %24 = vector.broadcast %14 : vector<16x1xf32> to vector<16x64xf32>
    %25 = arith.subf %3, %24 : vector<16x64xf32>
    %26 = vector.broadcast %23 : vector<16x1xf32> to vector<16x64xf32>
    %27 = arith.mulf %25, %26 : vector<16x64xf32>
    %28 = vector.broadcast %5 : vector<1x64xf32> to vector<16x64xf32>
    %29 = arith.mulf %27, %28 : vector<16x64xf32>
    %30 = vector.broadcast %7 : vector<1x64xf32> to vector<16x64xf32>
    %31 = arith.addf %29, %30 : vector<16x64xf32>
    %32 = arith.truncf %31 : vector<16x64xf32> to vector<16x64xbf16>
    %c0_13 = arith.constant 0 : index
    %c0_14 = arith.constant 0 : index
    %c0_15 = arith.constant 0 : index
    %33 = vector.load %arg5[%c0_13, %c0_14, %c0_15] : memref<1x64x192xbf16, #tpu.memory_space<vmem>>, vector<1x64x192xbf16>
    %34 = vector.shape_cast %33 : vector<1x64x192xbf16> to vector<64x192xbf16>
    %cst_16 = arith.constant dense<0.000000e+00> : vector<16x192xf32>
    %35 = tpu.matmul %32, %34, %cst_16 {dimension_numbers = #tpu.dot_dimension_numbers<[1], [0], [0], [1], [0, 0, 1, 1], [], []>} : vector<16x64xbf16>, vector<64x192xbf16>, vector<16x192xf32> -> vector<16x192xf32>
    %c0_17 = arith.constant 0 : index
    %c0_18 = arith.constant 0 : index
    %c0_19 = arith.constant 0 : index
    %36 = vector.load %arg6[%c0_17, %c0_18, %c0_19] : memref<1x1x192xf32, #tpu.memory_space<vmem>>, vector<1x1x192xf32>
    %37 = vector.shape_cast %36 : vector<1x1x192xf32> to vector<1x192xf32>
    %38 = vector.broadcast %37 : vector<1x192xf32> to vector<16x192xf32>
    %39 = arith.addf %35, %38 : vector<16x192xf32>
    %40 = vector.extract_strided_slice %39 {offsets = [0, 0], sizes = [16, 16], strides = [1, 1]} : vector<16x192xf32> to vector<16x16xf32>
    %cst_20 = arith.constant 2.500000e-01 : f32
    %41 = vector.broadcast %cst_20 : f32 to vector<16x16xf32>
    %42 = arith.mulf %40, %41 : vector<16x16xf32>
    %43 = vector.shape_cast %42 : vector<16x16xf32> to vector<2x8x16xf32>
    %44 = vector.extract_strided_slice %39 {offsets = [0, 16], sizes = [16, 16], strides = [1, 1]} : vector<16x192xf32> to vector<16x16xf32>
    %cst_21 = arith.constant 2.500000e-01 : f32
    %45 = vector.broadcast %cst_21 : f32 to vector<16x16xf32>
    %46 = arith.mulf %44, %45 : vector<16x16xf32>
    %47 = vector.shape_cast %46 : vector<16x16xf32> to vector<2x8x16xf32>
    %48 = vector.extract_strided_slice %39 {offsets = [0, 32], sizes = [16, 16], strides = [1, 1]} : vector<16x192xf32> to vector<16x16xf32>
    %cst_22 = arith.constant 2.500000e-01 : f32
    %49 = vector.broadcast %cst_22 : f32 to vector<16x16xf32>
    %50 = arith.mulf %48, %49 : vector<16x16xf32>
    %51 = vector.shape_cast %50 : vector<16x16xf32> to vector<2x8x16xf32>
    %52 = vector.extract_strided_slice %39 {offsets = [0, 48], sizes = [16, 16], strides = [1, 1]} : vector<16x192xf32> to vector<16x16xf32>
    %cst_23 = arith.constant 2.500000e-01 : f32
    %53 = vector.broadcast %cst_23 : f32 to vector<16x16xf32>
    %54 = arith.mulf %52, %53 : vector<16x16xf32>
    %55 = vector.shape_cast %54 : vector<16x16xf32> to vector<2x8x16xf32>
    %56 = tpu.concatenate %43, %47, %51, %55 in 0 : vector<2x8x16xf32>, vector<2x8x16xf32>, vector<2x8x16xf32>, vector<2x8x16xf32> -> vector<8x8x16xf32>
    %57 = arith.truncf %56 : vector<8x8x16xf32> to vector<8x8x16xbf16>
    %58 = vector.extract_strided_slice %39 {offsets = [0, 64], sizes = [16, 16], strides = [1, 1]} : vector<16x192xf32> to vector<16x16xf32>
    %59 = vector.shape_cast %58 : vector<16x16xf32> to vector<2x8x16xf32>
    %60 = vector.extract_strided_slice %39 {offsets = [0, 80], sizes = [16, 16], strides = [1, 1]} : vector<16x192xf32> to vector<16x16xf32>
    %61 = vector.shape_cast %60 : vector<16x16xf32> to vector<2x8x16xf32>
    %62 = vector.extract_strided_slice %39 {offsets = [0, 96], sizes = [16, 16], strides = [1, 1]} : vector<16x192xf32> to vector<16x16xf32>
    %63 = vector.shape_cast %62 : vector<16x16xf32> to vector<2x8x16xf32>
    %64 = vector.extract_strided_slice %39 {offsets = [0, 112], sizes = [16, 16], strides = [1, 1]} : vector<16x192xf32> to vector<16x16xf32>
    %65 = vector.shape_cast %64 : vector<16x16xf32> to vector<2x8x16xf32>
    %66 = tpu.concatenate %59, %61, %63, %65 in 0 : vector<2x8x16xf32>, vector<2x8x16xf32>, vector<2x8x16xf32>, vector<2x8x16xf32> -> vector<8x8x16xf32>
    %67 = arith.truncf %66 : vector<8x8x16xf32> to vector<8x8x16xbf16>
    %68 = vector.extract_strided_slice %39 {offsets = [0, 128], sizes = [16, 16], strides = [1, 1]} : vector<16x192xf32> to vector<16x16xf32>
    %69 = vector.shape_cast %68 : vector<16x16xf32> to vector<2x8x16xf32>
    %70 = vector.extract_strided_slice %39 {offsets = [0, 144], sizes = [16, 16], strides = [1, 1]} : vector<16x192xf32> to vector<16x16xf32>
    %71 = vector.shape_cast %70 : vector<16x16xf32> to vector<2x8x16xf32>
    %72 = vector.extract_strided_slice %39 {offsets = [0, 160], sizes = [16, 16], strides = [1, 1]} : vector<16x192xf32> to vector<16x16xf32>
    %73 = vector.shape_cast %72 : vector<16x16xf32> to vector<2x8x16xf32>
    %74 = vector.extract_strided_slice %39 {offsets = [0, 176], sizes = [16, 16], strides = [1, 1]} : vector<16x192xf32> to vector<16x16xf32>
    %75 = vector.shape_cast %74 : vector<16x16xf32> to vector<2x8x16xf32>
    %76 = tpu.concatenate %69, %71, %73, %75 in 0 : vector<2x8x16xf32>, vector<2x8x16xf32>, vector<2x8x16xf32>, vector<2x8x16xf32> -> vector<8x8x16xf32>
    %77 = arith.truncf %76 : vector<8x8x16xf32> to vector<8x8x16xbf16>
    "tpu.trace_start"() <{level = 10 : i32, message = "bqd,bkd->bqk"}> : () -> ()
    %cst_24 = arith.constant dense<0.000000e+00> : vector<8x8x8xf32>
    %78 = tpu.matmul %57, %67, %cst_24 {dimension_numbers = #tpu.dot_dimension_numbers<[2], [2], [1], [1], [0, 0, 0, 1, 1, 1], [0], [0]>} : vector<8x8x16xbf16>, vector<8x8x16xbf16>, vector<8x8x8xf32> -> vector<8x8x8xf32>
    "tpu.trace_stop"() : () -> ()
    %79 = tpu.iota {dimensions = array<i32: 2>} : vector<8x8x8xi32>
    %c5_i32 = arith.constant 5 : i32
    %80 = vector.broadcast %c5_i32 : i32 to vector<8x8x8xi32>
    %81 = arith.cmpi slt, %79, %80 : vector<8x8x8xi32>
    %cst_25 = arith.constant -1.000000e+30 : f32
    %82 = vector.broadcast %cst_25 : f32 to vector<8x8x8xf32>
    %83 = arith.select %81, %78, %82 : vector<8x8x8xi1>, vector<8x8x8xf32>
    %cst_26 = arith.constant dense<0xFF800000> : vector<8x8xf32>
    %84 = vector.multi_reduction <maximumf>, %83, %cst_26 [2] : vector<8x8x8xf32> to vector<8x8xf32>
    %85 = vector.shape_cast %84 : vector<8x8xf32> to vector<8x8x1xf32>
    %86 = vector.broadcast %85 : vector<8x8x1xf32> to vector<8x8x8xf32>
    %87 = arith.subf %83, %86 : vector<8x8x8xf32>
    %88 = math.exp %87 : vector<8x8x8xf32>
    %cst_27 = arith.constant dense<0.000000e+00> : vector<8x8xf32>
    %89 = vector.multi_reduction <add>, %88, %cst_27 [2] : vector<8x8x8xf32> to vector<8x8xf32>
    %90 = vector.shape_cast %89 : vector<8x8xf32> to vector<8x8x1xf32>
    %91 = tpu.reciprocal %90 {approx = true} : vector<8x8x1xf32> -> vector<8x8x1xf32>
    %92 = vector.broadcast %91 : vector<8x8x1xf32> to vector<8x8x8xf32>
    %93 = arith.mulf %88, %92 : vector<8x8x8xf32>
    %94 = arith.truncf %93 : vector<8x8x8xf32> to vector<8x8x8xbf16>
    "tpu.trace_start"() <{level = 10 : i32, message = "bqk,bkd->bqd"}> : () -> ()
    %cst_28 = arith.constant dense<0.000000e+00> : vector<8x8x16xf32>
    %95 = tpu.matmul %94, %77, %cst_28 {dimension_numbers = #tpu.dot_dimension_numbers<[2], [1], [1], [2], [0, 0, 0, 1, 1, 2], [0], [0]>} : vector<8x8x8xbf16>, vector<8x8x16xbf16>, vector<8x8x16xf32> -> vector<8x8x16xf32>
    "tpu.trace_stop"() : () -> ()
    %96 = vector.extract_strided_slice %95 {offsets = [0, 0, 0], sizes = [2, 8, 16], strides = [1, 1, 1]} : vector<8x8x16xf32> to vector<2x8x16xf32>
    %97 = vector.shape_cast %96 : vector<2x8x16xf32> to vector<16x16xf32>
    %98 = vector.extract_strided_slice %95 {offsets = [2, 0, 0], sizes = [2, 8, 16], strides = [1, 1, 1]} : vector<8x8x16xf32> to vector<2x8x16xf32>
    %99 = vector.shape_cast %98 : vector<2x8x16xf32> to vector<16x16xf32>
    %100 = vector.extract_strided_slice %95 {offsets = [4, 0, 0], sizes = [2, 8, 16], strides = [1, 1, 1]} : vector<8x8x16xf32> to vector<2x8x16xf32>
    %101 = vector.shape_cast %100 : vector<2x8x16xf32> to vector<16x16xf32>
    %102 = vector.extract_strided_slice %95 {offsets = [6, 0, 0], sizes = [2, 8, 16], strides = [1, 1, 1]} : vector<8x8x16xf32> to vector<2x8x16xf32>
    %103 = vector.shape_cast %102 : vector<2x8x16xf32> to vector<16x16xf32>
    %104 = tpu.concatenate %97, %99, %101, %103 in 1 : vector<16x16xf32>, vector<16x16xf32>, vector<16x16xf32>, vector<16x16xf32> -> vector<16x64xf32>
    %105 = arith.truncf %104 : vector<16x64xf32> to vector<16x64xbf16>
    %c0_29 = arith.constant 0 : index
    %c0_30 = arith.constant 0 : index
    %c0_31 = arith.constant 0 : index
    %106 = vector.load %arg7[%c0_29, %c0_30, %c0_31] : memref<1x64x64xbf16, #tpu.memory_space<vmem>>, vector<1x64x64xbf16>
    %107 = vector.shape_cast %106 : vector<1x64x64xbf16> to vector<64x64xbf16>
    %cst_32 = arith.constant dense<0.000000e+00> : vector<16x64xf32>
    %108 = tpu.matmul %105, %107, %cst_32 {dimension_numbers = #tpu.dot_dimension_numbers<[1], [0], [0], [1], [0, 0, 1, 1], [], []>} : vector<16x64xbf16>, vector<64x64xbf16>, vector<16x64xf32> -> vector<16x64xf32>
    %c0_33 = arith.constant 0 : index
    %c0_34 = arith.constant 0 : index
    %c0_35 = arith.constant 0 : index
    %109 = vector.load %arg8[%c0_33, %c0_34, %c0_35] : memref<1x1x64xf32, #tpu.memory_space<vmem>>, vector<1x1x64xf32>
    %110 = vector.shape_cast %109 : vector<1x1x64xf32> to vector<1x64xf32>
    %111 = vector.broadcast %110 : vector<1x64xf32> to vector<16x64xf32>
    %112 = arith.addf %108, %111 : vector<16x64xf32>
    %113 = arith.addf %3, %112 : vector<16x64xf32>
    %c0_36 = arith.constant 0 : index
    %c0_37 = arith.constant 0 : index
    %c0_38 = arith.constant 0 : index
    %114 = vector.load %arg9[%c0_36, %c0_37, %c0_38] : memref<1x1x64xf32, #tpu.memory_space<vmem>>, vector<1x1x64xf32>
    %115 = vector.shape_cast %114 : vector<1x1x64xf32> to vector<1x64xf32>
    %c0_39 = arith.constant 0 : index
    %c0_40 = arith.constant 0 : index
    %c0_41 = arith.constant 0 : index
    %116 = vector.load %arg10[%c0_39, %c0_40, %c0_41] : memref<1x1x64xf32, #tpu.memory_space<vmem>>, vector<1x1x64xf32>
    %117 = vector.shape_cast %116 : vector<1x1x64xf32> to vector<1x64xf32>
    %cst_42 = arith.constant dense<0.000000e+00> : vector<16xf32>
    %118 = vector.multi_reduction <add>, %113, %cst_42 [1] : vector<16x64xf32> to vector<16xf32>
    %119 = vector.shape_cast %118 : vector<16xf32> to vector<16x1xf32>
    %120 = arith.mulf %113, %113 : vector<16x64xf32>
    %cst_43 = arith.constant dense<0.000000e+00> : vector<16xf32>
    %121 = vector.multi_reduction <add>, %120, %cst_43 [1] : vector<16x64xf32> to vector<16xf32>
    %122 = vector.shape_cast %121 : vector<16xf32> to vector<16x1xf32>
    %cst_44 = arith.constant 1.562500e-02 : f32
    %123 = vector.broadcast %cst_44 : f32 to vector<16x1xf32>
    %124 = arith.mulf %119, %123 : vector<16x1xf32>
    %cst_45 = arith.constant 1.562500e-02 : f32
    %125 = vector.broadcast %cst_45 : f32 to vector<16x1xf32>
    %126 = arith.mulf %122, %125 : vector<16x1xf32>
    %127 = arith.mulf %124, %124 : vector<16x1xf32>
    %128 = arith.subf %126, %127 : vector<16x1xf32>
    %cst_46 = arith.constant 0.000000e+00 : f32
    %129 = vector.broadcast %cst_46 : f32 to vector<16x1xf32>
    %130 = arith.maximumf %128, %129 : vector<16x1xf32>
    %cst_47 = arith.constant 9.99999997E-7 : f32
    %131 = vector.broadcast %cst_47 : f32 to vector<16x1xf32>
    %132 = arith.addf %130, %131 : vector<16x1xf32>
    %133 = math.rsqrt %132 : vector<16x1xf32>
    %134 = vector.broadcast %124 : vector<16x1xf32> to vector<16x64xf32>
    %135 = arith.subf %113, %134 : vector<16x64xf32>
    %136 = vector.broadcast %133 : vector<16x1xf32> to vector<16x64xf32>
    %137 = arith.mulf %135, %136 : vector<16x64xf32>
    %138 = vector.broadcast %115 : vector<1x64xf32> to vector<16x64xf32>
    %139 = arith.mulf %137, %138 : vector<16x64xf32>
    %140 = vector.broadcast %117 : vector<1x64xf32> to vector<16x64xf32>
    %141 = arith.addf %139, %140 : vector<16x64xf32>
    %142 = arith.truncf %141 : vector<16x64xf32> to vector<16x64xbf16>
    %c0_48 = arith.constant 0 : index
    %c0_49 = arith.constant 0 : index
    %c0_50 = arith.constant 0 : index
    %143 = vector.load %arg11[%c0_48, %c0_49, %c0_50] : memref<1x64x256xbf16, #tpu.memory_space<vmem>>, vector<1x64x256xbf16>
    %144 = vector.shape_cast %143 : vector<1x64x256xbf16> to vector<64x256xbf16>
    %cst_51 = arith.constant dense<0.000000e+00> : vector<16x256xf32>
    %145 = tpu.matmul %142, %144, %cst_51 {dimension_numbers = #tpu.dot_dimension_numbers<[1], [0], [0], [1], [0, 0, 1, 1], [], []>} : vector<16x64xbf16>, vector<64x256xbf16>, vector<16x256xf32> -> vector<16x256xf32>
    %c0_52 = arith.constant 0 : index
    %c0_53 = arith.constant 0 : index
    %c0_54 = arith.constant 0 : index
    %146 = vector.load %arg12[%c0_52, %c0_53, %c0_54] : memref<1x1x256xf32, #tpu.memory_space<vmem>>, vector<1x1x256xf32>
    %147 = vector.shape_cast %146 : vector<1x1x256xf32> to vector<1x256xf32>
    %148 = vector.broadcast %147 : vector<1x256xf32> to vector<16x256xf32>
    %149 = arith.addf %145, %148 : vector<16x256xf32>
    %cst_55 = arith.constant 5.000000e-01 : f32
    %150 = vector.broadcast %cst_55 : f32 to vector<16x256xf32>
    %151 = arith.mulf %150, %149 : vector<16x256xf32>
    %cst_56 = arith.constant 0.707106769 : f32
    %152 = vector.broadcast %cst_56 : f32 to vector<16x256xf32>
    %153 = arith.mulf %149, %152 : vector<16x256xf32>
    %154 = math.absf %153 : vector<16x256xf32>
    %cst_57 = arith.constant 0.327591091 : f32
    %155 = vector.broadcast %cst_57 : f32 to vector<16x256xf32>
    %156 = arith.mulf %155, %154 : vector<16x256xf32>
    %cst_58 = arith.constant 1.000000e+00 : f32
    %157 = vector.broadcast %cst_58 : f32 to vector<16x256xf32>
    %158 = arith.addf %157, %156 : vector<16x256xf32>
    %cst_59 = arith.constant 1.000000e+00 : f32
    %159 = vector.broadcast %cst_59 : f32 to vector<16x256xf32>
    %160 = arith.divf %159, %158 : vector<16x256xf32>
    %cst_60 = arith.constant 1.06140542 : f32
    %161 = vector.broadcast %cst_60 : f32 to vector<16x256xf32>
    %162 = arith.mulf %161, %160 : vector<16x256xf32>
    %cst_61 = arith.constant -1.45315206 : f32
    %163 = vector.broadcast %cst_61 : f32 to vector<16x256xf32>
    %164 = arith.addf %162, %163 : vector<16x256xf32>
    %165 = arith.mulf %164, %160 : vector<16x256xf32>
    %cst_62 = arith.constant 1.42141378 : f32
    %166 = vector.broadcast %cst_62 : f32 to vector<16x256xf32>
    %167 = arith.addf %165, %166 : vector<16x256xf32>
    %168 = arith.mulf %167, %160 : vector<16x256xf32>
    %cst_63 = arith.constant -0.284496725 : f32
    %169 = vector.broadcast %cst_63 : f32 to vector<16x256xf32>
    %170 = arith.addf %168, %169 : vector<16x256xf32>
    %171 = arith.mulf %170, %160 : vector<16x256xf32>
    %cst_64 = arith.constant 0.254829586 : f32
    %172 = vector.broadcast %cst_64 : f32 to vector<16x256xf32>
    %173 = arith.addf %171, %172 : vector<16x256xf32>
    %174 = arith.mulf %173, %160 : vector<16x256xf32>
    %cst_65 = arith.constant 0.000000e+00 : f32
    %175 = vector.broadcast %cst_65 : f32 to vector<16x256xf32>
    %176 = arith.subf %175, %154 : vector<16x256xf32>
    %177 = arith.mulf %176, %154 : vector<16x256xf32>
    %178 = math.exp %177 : vector<16x256xf32>
    %179 = arith.mulf %174, %178 : vector<16x256xf32>
    %cst_66 = arith.constant 1.000000e+00 : f32
    %180 = vector.broadcast %cst_66 : f32 to vector<16x256xf32>
    %181 = arith.subf %180, %179 : vector<16x256xf32>
    %cst_67 = arith.constant 0.000000e+00 : f32
    %182 = vector.broadcast %cst_67 : f32 to vector<16x256xf32>
    %183 = arith.cmpf oge, %153, %182 : vector<16x256xf32>
    %cst_68 = arith.constant 0.000000e+00 : f32
    %184 = vector.broadcast %cst_68 : f32 to vector<16x256xf32>
    %185 = arith.subf %184, %181 : vector<16x256xf32>
    %186 = arith.select %183, %181, %185 : vector<16x256xi1>, vector<16x256xf32>
    %cst_69 = arith.constant 1.000000e+00 : f32
    %187 = vector.broadcast %cst_69 : f32 to vector<16x256xf32>
    %188 = arith.addf %187, %186 : vector<16x256xf32>
    %189 = arith.mulf %151, %188 : vector<16x256xf32>
    %190 = arith.truncf %189 : vector<16x256xf32> to vector<16x256xbf16>
    %c0_70 = arith.constant 0 : index
    %c0_71 = arith.constant 0 : index
    %c0_72 = arith.constant 0 : index
    %191 = vector.load %arg13[%c0_70, %c0_71, %c0_72] : memref<1x256x64xbf16, #tpu.memory_space<vmem>>, vector<1x256x64xbf16>
    %192 = vector.shape_cast %191 : vector<1x256x64xbf16> to vector<256x64xbf16>
    %cst_73 = arith.constant dense<0.000000e+00> : vector<16x64xf32>
    %193 = tpu.matmul %190, %192, %cst_73 {dimension_numbers = #tpu.dot_dimension_numbers<[1], [0], [0], [1], [0, 0, 1, 1], [], []>} : vector<16x256xbf16>, vector<256x64xbf16>, vector<16x64xf32> -> vector<16x64xf32>
    %c0_74 = arith.constant 0 : index
    %c0_75 = arith.constant 0 : index
    %c0_76 = arith.constant 0 : index
    %194 = vector.load %arg14[%c0_74, %c0_75, %c0_76] : memref<1x1x64xf32, #tpu.memory_space<vmem>>, vector<1x1x64xf32>
    %195 = vector.shape_cast %194 : vector<1x1x64xf32> to vector<1x64xf32>
    %196 = vector.broadcast %195 : vector<1x64xf32> to vector<16x64xf32>
    %197 = arith.addf %193, %196 : vector<16x64xf32>
    %198 = arith.addf %113, %197 : vector<16x64xf32>
    %c0_77 = arith.constant 0 : index
    %c0_78 = arith.constant 0 : index
    %199 = vector.load %arg16[%c0_77, %c0_78] : memref<16x64xf32, #tpu.memory_space<vmem>>, vector<16x64xf32>
    tpu.vector_store %arg16[%c0_77, %c0_78], %198 {strides = array<i32>} : memref<16x64xf32, #tpu.memory_space<vmem>>, vector<16x64xf32>,
    %c1_i32 = arith.constant 1 : i32
    %200 = arith.cmpi eq, %arg1, %c1_i32 : i32
    %201 = arith.extui %200 : i1 to i32
    %c0_i32_79 = arith.constant 0 : i32
    %202 = arith.cmpi ne, %201, %c0_i32_79 : i32
    scf.if %202 {
      %203 = vector.shape_cast %198 : vector<16x64xf32> to vector<2x8x64xf32>
      %204 = vector.extract_strided_slice %203 {offsets = [0, 0, 0], sizes = [2, 1, 64], strides = [1, 1, 1]} : vector<2x8x64xf32> to vector<2x1x64xf32>
      %205 = vector.shape_cast %204 : vector<2x1x64xf32> to vector<2x64xf32>
      %c0_80 = arith.constant 0 : index
      %c0_81 = arith.constant 0 : index
      %c0_82 = arith.constant 0 : index
      %206 = vector.load %arg15[%c0_80, %c0_81, %c0_82] : memref<1x2x64xf32, #tpu.memory_space<vmem>>, vector<1x2x64xf32>
      %207 = vector.shape_cast %206 : vector<1x2x64xf32> to vector<2x64xf32>
      %208 = vector.shape_cast %205 : vector<2x64xf32> to vector<1x2x64xf32>
      tpu.vector_store %arg15[%c0_80, %c0_81, %c0_82], %208 {strides = array<i32>} : memref<1x2x64xf32, #tpu.memory_space<vmem>>, vector<1x2x64xf32>,
    } else {
    }
    return
  }
  func.func @transform_0(%arg0: i32, %arg1: i32) -> (i32, i32) {
    %c0_i32 = arith.constant 0 : i32
    %c0_i32_0 = arith.constant 0 : i32
    return %arg0, %c0_i32 : i32, i32
  }
  func.func @transform_1(%arg0: i32, %arg1: i32) -> (i32, i32, i32) {
    %c0_i32 = arith.constant 0 : i32
    %c0_i32_0 = arith.constant 0 : i32
    %c0_i32_1 = arith.constant 0 : i32
    return %arg1, %c0_i32, %c0_i32_0 : i32, i32, i32
  }
  func.func @transform_2(%arg0: i32, %arg1: i32) -> (i32, i32, i32) {
    %c0_i32 = arith.constant 0 : i32
    %c0_i32_0 = arith.constant 0 : i32
    %c0_i32_1 = arith.constant 0 : i32
    return %arg1, %c0_i32, %c0_i32_0 : i32, i32, i32
  }
  func.func @transform_3(%arg0: i32, %arg1: i32) -> (i32, i32, i32) {
    %c0_i32 = arith.constant 0 : i32
    %c0_i32_0 = arith.constant 0 : i32
    %c0_i32_1 = arith.constant 0 : i32
    return %arg1, %c0_i32, %c0_i32_0 : i32, i32, i32
  }
  func.func @transform_4(%arg0: i32, %arg1: i32) -> (i32, i32, i32) {
    %c0_i32 = arith.constant 0 : i32
    %c0_i32_0 = arith.constant 0 : i32
    %c0_i32_1 = arith.constant 0 : i32
    return %arg1, %c0_i32, %c0_i32_0 : i32, i32, i32
  }
  func.func @transform_5(%arg0: i32, %arg1: i32) -> (i32, i32, i32) {
    %c0_i32 = arith.constant 0 : i32
    %c0_i32_0 = arith.constant 0 : i32
    %c0_i32_1 = arith.constant 0 : i32
    return %arg1, %c0_i32, %c0_i32_0 : i32, i32, i32
  }
  func.func @transform_6(%arg0: i32, %arg1: i32) -> (i32, i32, i32) {
    %c0_i32 = arith.constant 0 : i32
    %c0_i32_0 = arith.constant 0 : i32
    %c0_i32_1 = arith.constant 0 : i32
    return %arg1, %c0_i32, %c0_i32_0 : i32, i32, i32
  }
  func.func @transform_7(%arg0: i32, %arg1: i32) -> (i32, i32, i32) {
    %c0_i32 = arith.constant 0 : i32
    %c0_i32_0 = arith.constant 0 : i32
    %c0_i32_1 = arith.constant 0 : i32
    return %arg1, %c0_i32, %c0_i32_0 : i32, i32, i32
  }
  func.func @transform_8(%arg0: i32, %arg1: i32) -> (i32, i32, i32) {
    %c0_i32 = arith.constant 0 : i32
    %c0_i32_0 = arith.constant 0 : i32
    %c0_i32_1 = arith.constant 0 : i32
    return %arg1, %c0_i32, %c0_i32_0 : i32, i32, i32
  }
  func.func @transform_9(%arg0: i32, %arg1: i32) -> (i32, i32, i32) {
    %c0_i32 = arith.constant 0 : i32
    %c0_i32_0 = arith.constant 0 : i32
    %c0_i32_1 = arith.constant 0 : i32
    return %arg1, %c0_i32, %c0_i32_0 : i32, i32, i32
  }
  func.func @transform_10(%arg0: i32, %arg1: i32) -> (i32, i32, i32) {
    %c0_i32 = arith.constant 0 : i32
    %c0_i32_0 = arith.constant 0 : i32
    %c0_i32_1 = arith.constant 0 : i32
    return %arg1, %c0_i32, %c0_i32_0 : i32, i32, i32
  }
  func.func @transform_11(%arg0: i32, %arg1: i32) -> (i32, i32, i32) {
    %c0_i32 = arith.constant 0 : i32
    %c0_i32_0 = arith.constant 0 : i32
    %c0_i32_1 = arith.constant 0 : i32
    return %arg1, %c0_i32, %c0_i32_0 : i32, i32, i32
  }
  func.func @transform_12(%arg0: i32, %arg1: i32) -> (i32, i32, i32) {
    %c0_i32 = arith.constant 0 : i32
    %c0_i32_0 = arith.constant 0 : i32
    %c0_i32_1 = arith.constant 0 : i32
    return %arg1, %c0_i32, %c0_i32_0 : i32, i32, i32
  }
  func.func @transform_13(%arg0: i32, %arg1: i32) -> (i32, i32, i32) {
    %c0_i32 = arith.constant 0 : i32
    %c0_i32_0 = arith.constant 0 : i32
    %c0_i32_1 = arith.constant 0 : i32
    return %arg0, %c0_i32, %c0_i32_0 : i32, i32, i32
  }
}

</mosaic_0001>

<bundles_post_ra>
// kernel: visformer_forward.5
= control target key start
LH: loop header
LB: loop body
LE: loop exit
PB: predicated region body
PF: predicated region fallthrough
CT: control target
= control target key end

     0   :  { %vm20_vm0 = vcmask 523264   ;;  %vm85_vm4 = vcmask 15360   ;;  %s191_s0 = inlined_call_operand.vmem [shape: f32[8,64], index: 0, kind: input, shape index: {}]   ;;  %s192_s1 = inlined_call_operand.vmem [shape: f32[1,64], index: 1, kind: input, shape index: {}]   ;;  %s193_s2 = inlined_call_operand.vmem [shape: f32[1,64], index: 2, kind: input, shape index: {}]   ;;  %s194_s3 = inlined_call_operand.vmem [shape: f32[64,2], index: 3, kind: input, shape index: {}]   ;;  %s195_s4 = inlined_call_operand.vmem [shape: f32[8,2], index: 4, kind: output, shape index: {}]  }
   0x1   :  { %v17_v0 = vld [vmem:[%s191_s0] sm:$0xff]  ;;  %v61_v4 = vld [vmem:[%s194_s3 + $0x38] sm:$0xff]  ;;  %v60_v5 = vld [vmem:[%s194_s3 + $0x30] sm:$0xff] }
   0x2   :  { %v21_v1 = vsel %vm20_vm0, %v17_v0, 0.0  ;;  %v24_v2 = vmul.f32 %v17_v0, %v17_v0  ;;  %73 = vmatpush.msra.mxu0 %v61_v4  ;;  %v59_v6 = vld [vmem:[%s194_s3 + $0x28] sm:$0xff]  ;;  %v58_v7 = vld [vmem:[%s194_s3 + $0x20] sm:$0xff]  ;;  %v57_v9 = vld [vmem:[%s194_s3 + $0x18] sm:$0xff] }
   0x3   :  { %22 = vadd.xlane.f32.xlu0 %v21_v1  ;;  %v56_v10 = vld [vmem:[%s194_s3 + $0x10] sm:$0xff]  ;;  %v55_v11 = vld [vmem:[%s194_s3 + $0x8] sm:$0xff]  ;;  %v54_v13 = vld [vmem:[%s194_s3] sm:$0xff] }
   0x4   :  { %v25_v3 = vsel %vm20_vm0, %v24_v2, 0.0  ;;  %74 = vmatpush.msra.mxu0 %v60_v5  ;;  %v116_v27 = vld [vmem:[%s192_s1] ss:$0 sm:$0xff] }
   0x5   :  { %v117_v30 = vld [vmem:[%s193_s2] ss:$0 sm:$0xff] }
   0x6   :  { %75 = vmatpush.msra.mxu0 %v59_v6 }
   0x8   :  { %76 = vmatpush.msra.mxu0 %v58_v7 }
   0xa   :  { %77 = vmatpush.msra.mxu0 %v57_v9 }
   0xb   :  { %26 = vadd.xlane.f32.xlu0 %v25_v3 }
   0xc   :  { %78 = vmatpush.msra.mxu0 %v56_v10 }
   0xe   :  { %79 = vmatpush.msra.mxu0 %v55_v11 }
  0x10   :  { %80 = vmatpush.msra.mxu0 %v54_v13 }
  0x76   :  { %v23_v8 = vpop.xlane.xlu0 %22 }
  0x77   :  { %v28_v12 = vmul.f32 0.015625, %v23_v8 }
  0x79   :  { %v30_v15 = vmul.f32 %v28_v12, %v28_v12  ;;  %v44_v26 = vsub.f32 %v17_v0, %v28_v12 }
  0x7e   :  { %v27_v14 = vpop.xlane.xlu0 %26 }
  0x7f   :  { %v29_v16 = vmul.f32 0.015625, %v27_v14 }
  0x81   :  { %v31_v17 = vsub.f32 %v29_v16, %v30_v15 }
  0x83   :  { %v32_v18 = vmax.f32 %v31_v17, 0.0 }
  0x85   :  { %v33_v19 = vadd.f32 1e-06, %v32_v18 }
  0x87   :  { %118 = vrsqrt.f32 %v33_v19  ;;  %vm40_vm2 = vweird.f32 %v33_v19 }
  0x8d   :  { %v119_v20 = vpop.eup %118 }
  0x8e   :  { %v35_v21 = vmul.f32 %v119_v20, %v33_v19  ;;  %vm41_vm1 = vweird.f32 %v119_v20 }
  0x8f   :  { %vm42_vm3 = vmor %vm40_vm2, %vm41_vm1 }
  0x90   :  { %v36_v22 = vmul.f32 %v119_v20, %v35_v21 }
  0x92   :  { %v37_v23 = vmul.f32 0.5, %v36_v22 }
  0x94   :  { %v38_v24 = vsub.f32 1.5, %v37_v23 }
  0x96   :  { %v39_v25 = vmul.f32 %v119_v20, %v38_v24 }
  0x98   :  { %v43_v28 = vsel %vm42_vm3, %v119_v20, %v39_v25 }
  0x99   :  { %v45_v29 = vmul.f32 %v44_v26, %v43_v28 }
  0x9b   :  { %v49_v31 = vmul.f32 %v116_v27, %v45_v29 }
  0x9d   :  { %v53_v32 = vadd.f32 %v117_v30, %v49_v31 }
  0x9f   :  { %115 = vmatmul.msk.f32.vlgmr.msra.gmra.mxu0 %vm20_vm0, %v53_v32 }
 0x11c   :  { %v82_v33 = vpop.f32.mrf.mxu0 }
 0x11d   :  { %v86_v34 = vsel %vm85_vm4, %v82_v33, -inf }
 0x11e   :  { %87 = vmax.xlane.f32.xlu1 %v86_v34 }
 0x191   :  { %v88_v35 = vpop.xlane.xlu1 %87 }
 0x192   :  { %v89_v36 = vsub.f32 %v82_v33, %v88_v35 }
 0x194   :  { %v90_v37 = vmul.f32 1.442695, %v89_v36 }
 0x196   :  { %120 = vpow2.f32 %v90_v37 }
 0x19c   :  { %v121_v38 = vpop.eup %120 }
 0x19d   :  { %v92_v39 = vsel %vm85_vm4, %v121_v38, 0.0 }
 0x19e   :  { %93 = vadd.xlane.f32.xlu1 %v92_v39 }
 0x211   :  { %v94_v40 = vpop.xlane.xlu1 %93 }
 0x212   :  { %122 = vrcp.f32 %v94_v40  ;;  %v106_v44 = vand.u32 2147483648, %v94_v40  ;;  %v104_v46 = vand.u32 2147483647, %v94_v40  ;;  %vm100_vm6 = vweird.f32 %v94_v40 }
 0x214   :  { %v107_v48 = vor.u32 1.1754944e-38, %v106_v44  ;;  %vm105_vm8 = vcmp.eq.f32.partialorder %v104_v46, 8.507059e+37 }
 0x218   :  { %v123_v41 = vpop.eup %122 }
 0x219   :  { %v96_v42 = vmul.f32 %v123_v41, %v94_v40  ;;  %vm101_vm5 = vweird.f32 %v123_v41 }
 0x21a   :  { %vm102_vm7 = vmor %vm100_vm6, %vm101_vm5 }
 0x21b   :  { %v97_v43 = vsub.f32 1.0, %v96_v42 }
 0x21d   :  { %v98_v45 = vmul.f32 %v123_v41, %v97_v43 }
 0x21f   :  { %v99_v47 = vadd.f32 %v123_v41, %v98_v45 }
 0x221   :  { %v103_v49 = vsel %vm102_vm7, %v123_v41, %v99_v47 }
 0x222   :  { %v108_v50 = vsel %vm105_vm8, %v107_v48, %v103_v49 }
 0x223   :  { %v109_v51 = vmul.f32 %v121_v38, %v108_v50 }
 0x225   :  { %110 = vst.msk [vmem:[%s195_s4] sm:$0xff] %vm85_vm4, %v109_v51 }

// kernel: visformer_forward.3
= control target key start
LH: loop header
LB: loop body
LE: loop exit
PB: predicated region body
PF: predicated region fallthrough
CT: control target
= control target key end

     0   :  { %s1013_s12 = smov 0   ;;  %s1195_s0 = inlined_call_operand.vmem [shape: f32[64,768], index: 0, kind: input, shape index: {}]   ;;  %s1196_s1 = inlined_call_operand.vmem [shape: bf16[768,64], index: 1, kind: input, shape index: {}]   ;;  %s1197_s2 = inlined_call_operand.vmem [shape: f32[8,64], index: 2, kind: input, shape index: {}]   ;;  %s1198_s3 = inlined_call_operand.vmem [shape: f32[64,64], index: 3, kind: output, shape index: {}]  }
   0x1 LB: > { %s725_s13 = sadd.s32 4294967295, %s991_s12   ;;  %p729_p0 = scmp.ge.s32.totalorder %s991_s12, 1  ;;  %s991_s12 = sphi %s1013_s12, %s13_s12  }
   0x2   : > { %p139_p1 = scmp.lt.s32.totalorder %s991_s12, 5 }
   0x4   : > { %p140_p2 = pnand %p729_p0, %p139_p1 }
   0x5   : > { %s730_s11 = sshll.u32 (!%p140_p2), %s725_s13, 1 }
   0x6   : > { %143 = sbr.rel (%p140_p2) target bundleno = 216 (0xd8), region = 32  ;;  %p165_p3 = scmp.lt.s32.totalorder (!%p140_p2), %s730_s11, 7 }
   0xb   : > { %v935_v0 = vld [vmem:[%s1196_s1 + $0x38] sm:$0xff]  ;;  %v934_v4 = vld [vmem:[%s1196_s1 + $0x30] sm:$0xff]  ;;  %v933_v8 = vld [vmem:[%s1196_s1 + $0x28] sm:$0xff]  ;;  %s1200_s11 = smov (!%p165_p3, %s730_s11), 7  ;;  %vm666_vm0 = vcmask 523264  }
   0xc   : > { %v943_v1 = vld [vmem:[%s1196_s1 + $0x78] sm:$0xff]  ;;  %579 = vmatpush.bf16.msra.mxu0 %v935_v0  ;;  %v942_v5 = vld [vmem:[%s1196_s1 + $0x70] sm:$0xff]  ;;  %v941_v9 = vld [vmem:[%s1196_s1 + $0x68] sm:$0xff]  ;;  %s976_s10 = smul.u32 48, %s1200_s11 }
   0xd   : > { %v951_v2 = vld [vmem:[%s1196_s1 + $0xb8] sm:$0xff]  ;;  %593 = vmatpush.bf16.msra.mxu1 %v943_v1  ;;  %v950_v6 = vld [vmem:[%s1196_s1 + $0xb0] sm:$0xff]  ;;  %v949_v10 = vld [vmem:[%s1196_s1 + $0xa8] sm:$0xff] }
   0xe   : > { %v959_v3 = vld [vmem:[%s1196_s1 + $0xf8] sm:$0xff]  ;;  %607 = vmatpush.bf16.msra.mxu2 %v951_v2  ;;  %v958_v7 = vld [vmem:[%s1196_s1 + $0xf0] sm:$0xff]  ;;  %v957_v11 = vld [vmem:[%s1196_s1 + $0xe8] sm:$0xff]  ;;  %s1117_s27 = scalar_lea.vmem %s1195_s0, %s976_s10 }
   0xf   : > { %621 = vmatpush.bf16.msra.mxu3 %v959_v3  ;;  %v932_v12 = vld [vmem:[%s1196_s1 + $0x20] sm:$0xff]  ;;  %v931_v16 = vld [vmem:[%s1196_s1 + $0x18] sm:$0xff]  ;;  %v930_v20 = vld [vmem:[%s1196_s1 + $0x10] sm:$0xff] }
  0x10   : > { %580 = vmatpush.bf16.msra.mxu0 %v934_v4  ;;  %v940_v13 = vld [vmem:[%s1196_s1 + $0x60] sm:$0xff]  ;;  %v939_v17 = vld [vmem:[%s1196_s1 + $0x58] sm:$0xff]  ;;  %v938_v21 = vld [vmem:[%s1196_s1 + $0x50] sm:$0xff] }
  0x11   : > { %594 = vmatpush.bf16.msra.mxu1 %v942_v5  ;;  %v948_v14 = vld [vmem:[%s1196_s1 + $0xa0] sm:$0xff]  ;;  %v947_v18 = vld [vmem:[%s1196_s1 + $0x98] sm:$0xff]  ;;  %v946_v22 = vld [vmem:[%s1196_s1 + $0x90] sm:$0xff] }
  0x12   : > { %608 = vmatpush.bf16.msra.mxu2 %v950_v6  ;;  %v956_v15 = vld [vmem:[%s1196_s1 + $0xe0] sm:$0xff]  ;;  %v955_v19 = vld [vmem:[%s1196_s1 + $0xd8] sm:$0xff]  ;;  %v954_v23 = vld [vmem:[%s1196_s1 + $0xd0] sm:$0xff] }
  0x13   : > { %622 = vmatpush.bf16.msra.mxu3 %v958_v7  ;;  %v929_v24 = vld [vmem:[%s1196_s1 + $0x8] sm:$0xff]  ;;  %v928_v28 = vld [vmem:[%s1196_s1] sm:$0xff]  ;;  %v967_v31 = vld [vmem:[%s1196_s1 + $0x138] sm:$0xff] }
  0x14   : > { %581 = vmatpush.bf16.msra.mxu0 %v933_v8  ;;  %v937_v25 = vld [vmem:[%s1196_s1 + $0x48] sm:$0xff]  ;;  %v936_v29 = vld [vmem:[%s1196_s1 + $0x40] sm:$0xff]  ;;  %v183_v33 = vld [vmem:[%s1117_s27 + $0x30] sm:$0xff] }
  0x15   : > { %595 = vmatpush.bf16.msra.mxu1 %v941_v9  ;;  %v945_v26 = vld [vmem:[%s1196_s1 + $0x88] sm:$0xff]  ;;  %v944_v30 = vld [vmem:[%s1196_s1 + $0x80] sm:$0xff]  ;;  %v184_v35 = vld [vmem:[%s1117_s27 + $0x38] sm:$0xff] }
  0x16   : > { %609 = vmatpush.bf16.msra.mxu2 %v949_v10  ;;  %v953_v27 = vld [vmem:[%s1196_s1 + $0xc8] sm:$0xff]  ;;  %v177_v32 = vld [vmem:[%s1117_s27] sm:$0xff]  ;;  %v975_v36 = vld [vmem:[%s1196_s1 + $0x178] sm:$0xff] }
  0x17   : > { %623 = vmatpush.bf16.msra.mxu3 %v957_v11  ;;  %v178_v34 = vld [vmem:[%s1117_s27 + $0x8] sm:$0xff]  ;;  %v179_v37 = vld [vmem:[%s1117_s27 + $0x10] sm:$0xff]  ;;  %v185_v38 = vld [vmem:[%s1117_s27 + $0x40] sm:$0xff]  ;;  %v189_v42 = vpack.c.bf16 %v183_v33, %v177_v32 }
  0x18   : > { %582 = vmatpush.bf16.msra.mxu0 %v932_v12  ;;  %v952_v39 = vld [vmem:[%s1196_s1 + $0xc0] sm:$0xff]  ;;  %v180_v40 = vld [vmem:[%s1117_s27 + $0x18] sm:$0xff]  ;;  %v186_v41 = vld [vmem:[%s1117_s27 + $0x48] sm:$0xff]  ;;  %v190_v43 = vpack.c.bf16 %v184_v35, %v178_v34  ;;  %v191_v44 = vpack.c.bf16 %v185_v38, %v179_v37 }
  0x19   : > { %596 = vmatpush.bf16.msra.mxu1 %v940_v13  ;;  %v966_v45 = vld [vmem:[%s1196_s1 + $0x130] sm:$0xff]  ;;  %v192_v46 = vpack.c.bf16 %v186_v41, %v180_v40  ;;  %v965_v48 = vld [vmem:[%s1196_s1 + $0x128] sm:$0xff]  ;;  %v964_v50 = vld [vmem:[%s1196_s1 + $0x120] sm:$0xff] }
  0x1a   : > { %610 = vmatpush.bf16.msra.mxu2 %v948_v14  ;;  %v974_v47 = vld [vmem:[%s1196_s1 + $0x170] sm:$0xff]  ;;  %v973_v49 = vld [vmem:[%s1196_s1 + $0x168] sm:$0xff]  ;;  %v972_v51 = vld [vmem:[%s1196_s1 + $0x160] sm:$0xff] }
  0x1b   : > { %624 = vmatpush.bf16.msra.mxu3 %v956_v15  ;;  %v963_v52 = vld [vmem:[%s1196_s1 + $0x118] sm:$0xff]  ;;  %v962_v54 = vld [vmem:[%s1196_s1 + $0x110] sm:$0xff]  ;;  %v961_v56 = vld [vmem:[%s1196_s1 + $0x108] sm:$0xff] }
  0x1c   : > { %583 = vmatpush.bf16.msra.mxu0 %v931_v16  ;;  %v971_v53 = vld [vmem:[%s1196_s1 + $0x158] sm:$0xff]  ;;  %v970_v55 = vld [vmem:[%s1196_s1 + $0x150] sm:$0xff]  ;;  %v969_v57 = vld [vmem:[%s1196_s1 + $0x148] sm:$0xff] }
  0x1d   : > { %597 = vmatpush.bf16.msra.mxu1 %v939_v17  ;;  %v960_v58 = vld [vmem:[%s1196_s1 + $0x100] sm:$0xff]  ;;  %v187_v60 = vld [vmem:[%s1117_s27 + $0x50] sm:$0xff]  ;;  %v182_v62 = vld [vmem:[%s1117_s27 + $0x28] sm:$0xff] }
  0x1e   : > { %611 = vmatpush.bf16.msra.mxu2 %v947_v18  ;;  %v181_v59 = vld [vmem:[%s1117_s27 + $0x20] sm:$0xff]  ;;  %v188_v63 = vld [vmem:[%s1117_s27 + $0x58] sm:$0xff]  ;;  %s733_s27 = sshll.u32 %s1200_s11, 3 }
  0x1f   : > { %625 = vmatpush.bf16.msra.mxu3 %v955_v19  ;;  %v968_v61 = vld [vmem:[%s1196_s1 + $0x140] sm:$0xff]  ;;  %v193_v0 = vpack.c.bf16 %v187_v60, %v181_v59  ;;  %v194_v1 = vpack.c.bf16 %v188_v63, %v182_v62  ;;  %s175_s20 = scalar_lea.vmem %s1198_s3, %s733_s27 }
  0x20   : > { %584 = vmatpush.bf16.msra.mxu0 %v930_v20  ;;  %v663_v16 = vld [vmem:[%s1197_s2] sm:$0xff] }
  0x21   : > { %598 = vmatpush.bf16.msra.mxu1 %v938_v21 }
  0x22   : > { %612 = vmatpush.bf16.msra.mxu2 %v946_v22 }
  0x23   : > { %626 = vmatpush.bf16.msra.mxu3 %v954_v23 }
  0x24   : > { %585 = vmatpush.bf16.msra.mxu0 %v929_v24 }
  0x25   : > { %599 = vmatpush.bf16.msra.mxu1 %v937_v25 }
  0x26   : > { %613 = vmatpush.bf16.msra.mxu2 %v945_v26 }
  0x27   : > { %627 = vmatpush.bf16.msra.mxu3 %v953_v27 }
  0x28   : > { %586 = vmatpush.bf16.msra.mxu0 %v928_v28 }
  0x29   : > { %600 = vmatpush.bf16.msra.mxu1 %v936_v29 }
  0x2a   : > { %614 = vmatpush.bf16.msra.mxu2 %v944_v30 }
  0x2b   : > { %628 = vmatpush.bf16.msra.mxu3 %v952_v39  ;;  %587 = vmatmul.bf16.vlgmr.msra.gmra.mxu0 %v189_v42 }
  0x2c   : > { %635 = vmatpush.bf16.msrb.mxu0 %v967_v31  ;;  %601 = vmatmul.bf16.vlgmr.msra.gmra.mxu1 %v190_v43 }
  0x2d   : > { %649 = vmatpush.bf16.msrb.mxu1 %v975_v36  ;;  %615 = vmatmul.bf16.vlgmr.msra.gmra.mxu2 %v191_v44 }
  0x2e   : > { %629 = vmatmul.bf16.vlgmr.msra.gmra.mxu3 %v192_v46 }
  0x30   : > { %636 = vmatpush.bf16.msrb.mxu0 %v966_v45 }
  0x31   : > { %650 = vmatpush.bf16.msrb.mxu1 %v974_v47 }
  0x34   : > { %637 = vmatpush.bf16.msrb.mxu0 %v965_v48 }
  0x35   : > { %651 = vmatpush.bf16.msrb.mxu1 %v973_v49 }
  0x38   : > { %638 = vmatpush.bf16.msrb.mxu0 %v964_v50 }
  0x39   : > { %652 = vmatpush.bf16.msrb.mxu1 %v972_v51 }
  0x3c   : > { %639 = vmatpush.bf16.msrb.mxu0 %v963_v52 }
  0x3d   : > { %653 = vmatpush.bf16.msrb.mxu1 %v971_v53 }
  0x40   : > { %640 = vmatpush.bf16.msrb.mxu0 %v962_v54 }
  0x41   : > { %654 = vmatpush.bf16.msrb.mxu1 %v970_v55 }
  0x44   : > { %641 = vmatpush.bf16.msrb.mxu0 %v961_v56 }
  0x45   : > { %655 = vmatpush.bf16.msrb.mxu1 %v969_v57 }
  0x48   : > { %642 = vmatpush.bf16.msrb.mxu0 %v960_v58 }
  0x49   : > { %656 = vmatpush.bf16.msrb.mxu1 %v968_v61 }
  0x4b   : > { %643 = vmatmul.bf16.vlgmr.msrb.gmra.mxu0 %v193_v0 }
  0x4c   : > { %657 = vmatmul.bf16.vlgmr.msrb.gmra.mxu1 %v194_v1 }
  0xa8   : > { %v588_v2 = vpop.f32.mrf.mxu0 }
  0xa9   : > { %v602_v3 = vpop.f32.mrf.mxu1 }
  0xaa   : > { %v603_v5 = vadd.f32 %v602_v3, %v588_v2 }
  0xb0   : > { %v616_v4 = vpop.f32.mrf.mxu2  ;;  %v590_v6 = vpop.f32.mrf.mxu0 }
  0xb1   : > { %v604_v7 = vpop.f32.mrf.mxu1  ;;  %v630_v8 = vpop.f32.mrf.mxu3  ;;  %v617_v9 = vadd.f32 %v616_v4, %v603_v5 }
  0xb2   : > { %v605_v11 = vadd.f32 %v604_v7, %v590_v6 }
  0xb3   : > { %v631_v10 = vadd.f32 %v630_v8, %v617_v9 }
  0xb8   : > { %v618_v12 = vpop.f32.mrf.mxu2 }
  0xb9   : > { %v619_v17 = vadd.f32 %v618_v12, %v605_v11  ;;  %v632_v19 = vpop.f32.mrf.mxu3 }
  0xbb   : > { %v633_v21 = vadd.f32 %v632_v19, %v619_v17 }
  0xc8   : > { %v644_v13 = vpop.f32.mrf.mxu0 }
  0xc9   : > { %v645_v14 = vadd.f32 %v644_v13, %v631_v10  ;;  %v658_v15 = vpop.f32.mrf.mxu1 }
  0xcb   : > { %v659_v18 = vadd.f32 %v658_v15, %v645_v14 }
  0xcd   : > { %v664_v20 = vadd.f32 %v663_v16, %v659_v18 }
  0xcf   : > { %667 = vst.msk [vmem:[%s175_s20] sm:$0xff] %vm666_vm0, %v664_v20 }
  0xd0   : > { %v646_v22 = vpop.f32.mrf.mxu0 }
  0xd1   : > { %v647_v23 = vadd.f32 %v646_v22, %v633_v21  ;;  %v660_v24 = vpop.f32.mrf.mxu1 }
  0xd3   : > { %v661_v25 = vadd.f32 %v660_v24, %v647_v23 }
  0xd5   : > { %v665_v26 = vadd.f32 %v663_v16, %v661_v25 }
  0xd7   : > { %668 = vst.msk [vmem:[%s175_s20 + $0x8] sm:$0xff] %vm666_vm0, %v665_v26 }
  0xd8 PF: > { %s13_s12 = sadd.s32 1, %s991_s12  }
  0xd9   : > { %p10_p4 = scmp.ge.s32.totalorder %s13_s12, 6  }
  0xdb   :  { %12 = sbr.rel (!%p10_p4) target bundleno = 1 (0x1), region = 62 }

// kernel: visformer_forward.4
= control target key start
LH: loop header
LB: loop body
LE: loop exit
PB: predicated region body
PF: predicated region fallthrough
CT: control target
= control target key end

     0   :  { %s2629_s25 = smov 0   ;;  %s2631_s26 = smov 0   ;;  %s3066_s0 = inlined_call_operand.vmem [shape: f32[64,64], index: 0, kind: input, shape index: {}]   ;;  %s3067_s1 = inlined_call_operand.vmem [shape: f32[2,1,64], index: 1, kind: input, shape index: {}]   ;;  %s3068_s2 = inlined_call_operand.vmem [shape: f32[2,1,64], index: 2, kind: input, shape index: {}]   ;;  %s3069_s3 = inlined_call_operand.vmem [shape: bf16[2,64,192], index: 3, kind: input, shape index: {}]   ;;  %s3070_s4 = inlined_call_operand.vmem [shape: f32[2,1,192], index: 4, kind: input, shape index: {}]   ;;  %s3071_s5 = inlined_call_operand.vmem [shape: bf16[2,64,64], index: 5, kind: input, shape index: {}]   ;;  %s3072_s6 = inlined_call_operand.vmem [shape: f32[2,1,64], index: 6, kind: input, shape index: {}]   ;;  %s3073_s7 = inlined_call_operand.vmem [shape: f32[2,1,64], index: 7, kind: input, shape index: {}]   ;;  %s3074_s8 = inlined_call_operand.vmem [shape: f32[2,1,64], index: 8, kind: input, shape index: {}]   ;;  %s3075_s9 = inlined_call_operand.vmem [shape: bf16[2,64,256], index: 9, kind: input, shape index: {}]   ;;  %s3076_s10 = inlined_call_operand.vmem [shape: f32[2,1,256], index: 10, kind: input, shape index: {}]   ;;  %s3077_s11 = inlined_call_operand.vmem [shape: bf16[2,256,64], index: 11, kind: input, shape index: {}]   ;;  %s3078_s12 = inlined_call_operand.vmem [shape: f32[2,1,64], index: 12, kind: input, shape index: {}]   ;;  %s3079_s13 = inlined_call_operand.vmem [shape: f32[4,2,64], index: 13, kind: output, shape index: {}]  }
   0x1   :  { %3085 = sst [smem:[#allocation10_spill]] %s3066_s0  ;;  %s2633_s27 = smov 0  }
   0x2   :  { %3086 = sst [smem:[#allocation11_spill]] %s3067_s1  ;;  %s2635_s28 = smov 0  }
   0x3   :  { %3087 = sst [smem:[#allocation12_spill]] %s3068_s2  ;;  %s2637_s29 = smov 0  }
   0x4   :  { %3088 = sst [smem:[#allocation13_spill]] %s3069_s3 }
   0x5   :  { %3089 = sst [smem:[#allocation14_spill]] %s3070_s4 }
   0x6 LB: > { %3090 = sst [smem:[#allocation3_spill]] %s2534_s25  ;;  %s32_s30 = sadd.s32 1, %s2542_s27  ;;  %s2550_s29 = sphi %s2637_s29, %s23_s29   ;;  %s2546_s28 = sphi %s2635_s28, %s3115_s28   ;;  %s2542_s27 = sphi %s2633_s27, %s3114_s27   ;;  %s2538_s26 = sphi %s2631_s26, %s3113_s26   ;;  %s2534_s25 = sphi %s2629_s25, %s3112_s25  }
   0x7   : > { %3091 = sst [smem:[#allocation4_spill]] %s2542_s27  ;;  %s35_s14 = sadd.s32 1, %s2546_s28 }
   0x8   : > { %3092 = sst [smem:[#allocation5_spill]] %s2546_s28  ;;  %p33_p0 = scmp.ge.s32.totalorder %s32_s30, 2 }
   0x9   : > { %3093 = sst [smem:[#allocation6_spill]] %s2550_s29  ;;  %p2120_p1 = scmp.ge.s32.totalorder %s2550_s29, 1 }
   0xa   : > { %p506_p2 = scmp.lt.s32.totalorder %s2550_s29, 9  ;;  %s3117_s30 = smov (%p33_p0, %s32_s30), 0 }
   0xb   : > { %3094 = sst [smem:[#allocation7_spill]] %s3117_s30  ;;  %s3119_s14 = smov (!%p33_p0, %s35_s14), %s2546_s28 }
   0xc   : > { %p507_p3 = pnand %p2120_p1, %p506_p2  ;;  %p37_p4 = scmp.ge.s32.totalorder %s3119_s14, 4 }
   0xe   : > { %s3121_s14 = smov (%p37_p4, %s3119_s14), 0  ;;  %510 = sbr.rel (%p507_p3) target bundleno = 1975 (0x7b7), region = 72 }
   0xf   : > { %3095 = sst [smem:[#allocation8_spill]] %s3121_s14 }
  0x13   : > { %s2121_s15 = sshll.u32 %s2538_s26, 1  ;;  %p601_p5 = scmp.lt.s32.totalorder %s2534_s25, 1 }
  0x14   : > { %p596_p6 = scmp.lt.s32.totalorder %s2121_s15, 7  ;;  %p647_p7 = scmp.lt.s32.totalorder %s2538_s26, 3 }
  0x15   : > { %s2667_s16 = scalar_select %p601_p5, %s2534_s25, 1 }
  0x16   : > { %s3123_s15 = smov (!%p596_p6, %s2121_s15), 7  ;;  %s3098_s0 = sld [smem:[#allocation10_spill]] }
  0x17   : > { %s2122_s23 = sshll.u32 %s3123_s15, 3  ;;  %s2303_s24 = sshll.u32 %s2667_s16, 6 }
  0x18   : > { %s3099_s3 = sld [smem:[#allocation13_spill]]  ;;  %s2125_s17 = sshll.u32 %s2667_s16, 1 }
  0x19   : > { %s2304_s18 = sshll.u32 %s2667_s16, 5  ;;  %s3101_s4 = sld [smem:[#allocation14_spill]] }
  0x1a   : > { %s2696_s22 = scalar_lea.vmem %s3071_s5, %s2304_s18  ;;  %s2718_s21 = scalar_lea.vmem %s3076_s10, %s2125_s17 }
  0x1b   : > { %s2306_s2 = sshll.u32 %s2667_s16, 7  ;;  %s3125_s26 = smov (!%p647_p7, %s2538_s26), 3 }
  0x1c   : > { %s599_s28 = scalar_lea.vmem %s3098_s0, %s2122_s23  ;;  %s2724_s23 = scalar_lea.vmem %s3077_s11, %s2306_s2 }
  0x1d   : > { %s646_s0 = scalar_lea.vmem %s3078_s12, %s2667_s16 }
  0x1e   : > { %s2684_s25 = scalar_lea.vmem %s3099_s3, %s2303_s24  ;;  %s2133_s3 = sshll.u32 %s3125_s26, 1 }
  0x1f   : > { %3100 = sst [smem:[#allocation9_spill]] %s2684_s25  ;;  %s2691_s20 = scalar_lea.vmem %s3101_s4, %s2125_s17 }
  0x20   : > { %s629_s25 = scalar_lea.vmem %s3074_s8, %s2667_s16  ;;  %s2713_s4 = scalar_lea.vmem %s3075_s9, %s2303_s24 }
  0x21   : > { %s2736_s19 = scalar_lea.vmem %s3079_s13, %s2133_s3  ;;  %s3102_s17 = sld [smem:[#allocation3_spill]] }
  0x27   : > { %p2134_p8 = scmp.ne.s32.totalorder %s3102_s17, 0 }
  0x29   : > { %655 = sbr.rel (%p2134_p8) target bundleno = 49 (0x31), region = 76 }
  0x2e   : > { %v656_v0 = vld [vmem:[%s599_s28] sm:$0xff]  ;;  %vm658_vm0 = vcmask 523264   ;;  %v657_v1 = vld [vmem:[%s599_s28 + $0x8] sm:$0xff] }
  0x2f   : > { %659 = vst.msk [vmem:[#allocation2] sm:$0xff] %vm658_vm0, %v656_v0 }
  0x30   : > { %660 = vst.msk [vmem:[#allocation2 + $0x8] sm:$0xff] %vm658_vm0, %v657_v1 }
  0x31 PF: > { %s3103_s14 = sld [smem:[#allocation9_spill]]  ;;  %vm665_vm1 = vcmask 523264   ;;  %s2552_s3 = smov 64   ;;  %vm903_vm8 = vcmask 130048   ;;  %vm1202_vm9 = vcmask 1043456   ;;  %vm1102_vm11 = vcmask 64512  }
  0x32   : > { %s3104_s29 = sld [smem:[#allocation11_spill]]  ;;  %s2553_s24 = smov 96   ;;  %vm1378_vm12 = vcmask 261120   ;;  %vm1381_vm13 = vcmask 392192  }
  0x33   : > { %s3106_s30 = sld [smem:[#allocation12_spill]]  ;;  %s2554_s1 = smov 112  }
  0x34   : > { %s2556_s17 = smov 32   ;;  %s2558_s26 = smov 48  }
  0x35   : > { %s3109_s18 = scalar_lea.vmem %s3073_s7, %s2667_s16 }
  0x36   : > { %v2739_v2 = vld [vmem:[#allocation2] sm:$0xff] }
  0x37   : > { %v666_v3 = vsel %vm665_vm1, %v2739_v2, 0.0  ;;  %v672_v4 = vmul.f32 %v2739_v2, %v2739_v2  ;;  %v2745_v5 = vld [vmem:[#allocation2 + $0x8] sm:$0xff]  ;;  %v2161_v10 = vld [vmem:[%s3103_s14 + $0x30] sm:$0xf]  ;;  %v2314_v11 = vld [vmem:[%s3103_s14 + $0x34] sm:$0xf0] }
  0x38   : > { %667 = vadd.xlane.f32.xlu0 %v666_v3  ;;  %v673_v7 = vmul.f32 %v2745_v5, %v2745_v5  ;;  %v669_v8 = vsel %vm665_vm1, %v2745_v5, 0.0  ;;  %v2162_v12 = vor.u32 %v2314_v11, %v2161_v10  ;;  %v2153_v14 = vld [vmem:[%s3103_s14 + $0x20] sm:$0xf]  ;;  %v2312_v15 = vld [vmem:[%s3103_s14 + $0x24] sm:$0xf0]  ;;  %s3105_s15 = scalar_lea.vmem %s3104_s29, %s2667_s16  ;;  %s3108_s29 = scalar_lea.vmem %s3072_s6, %s2667_s16 }
  0x39   : > { %v674_v6 = vsel %vm665_vm1, %v672_v4, 0.0  ;;  %v2154_v17 = vor.u32 %v2312_v15, %v2153_v14  ;;  %v2145_v21 = vld [vmem:[%s3103_s14 + $0x10] sm:$0xf]  ;;  %v2310_v22 = vld [vmem:[%s3103_s14 + $0x14] sm:$0xf0]  ;;  %s3107_s27 = scalar_lea.vmem %s3106_s30, %s2667_s16 }
  0x3a   : > { %675 = vadd.xlane.f32.xlu1 %v674_v6  ;;  %v677_v9 = vsel %vm665_vm1, %v673_v7, 0.0  ;;  %788 = vmatpush.bf16.msra.mxu1 %v2162_v12  ;;  %v2146_v23 = vor.u32 %v2310_v22, %v2145_v21  ;;  %v2137_v24 = vld [vmem:[%s3103_s14] sm:$0xf]  ;;  %v2308_v25 = vld [vmem:[%s3103_s14 + $0x4] sm:$0xf0] }
  0x3b   : > { %v2138_v28 = vor.u32 %v2308_v25, %v2137_v24  ;;  %v2313_v35 = vld [vmem:[%s3103_s14 + $0x34] sm:$0xf]  ;;  %v2163_v36 = vld [vmem:[%s3103_s14 + $0x38] sm:$0xf0]  ;;  %v2311_v39 = vld [vmem:[%s3103_s14 + $0x24] sm:$0xf] }
  0x3c   : > { %v2166_v37 = vor.u32 %v2313_v35, %v2163_v36  ;;  %v2155_v40 = vld [vmem:[%s3103_s14 + $0x28] sm:$0xf0]  ;;  %v2309_v43 = vld [vmem:[%s3103_s14 + $0x14] sm:$0xf]  ;;  %v2147_v44 = vld [vmem:[%s3103_s14 + $0x18] sm:$0xf0] }
  0x3d   : > { %v2158_v41 = vor.u32 %v2311_v39, %v2155_v40  ;;  %v2150_v48 = vor.u32 %v2309_v43, %v2147_v44  ;;  %v2307_v50 = vld [vmem:[%s3103_s14 + $0x4] sm:$0xf]  ;;  %v2139_v51 = vld [vmem:[%s3103_s14 + $0x8] sm:$0xf0]  ;;  %v2450_v0 = vld [vmem:[%s3105_s15] ss:$0 sm:$0xff] }
  0x3e   : > { %789 = vmatpush.bf16.msra.mxu1 %v2154_v17  ;;  %v2142_v53 = vor.u32 %v2307_v50, %v2139_v51  ;;  %s2557_s14 = smov 16  }
  0x40   : > { %670 = vadd.xlane.f32.xlu0 %v669_v8  ;;  %v2451_v8 = vld [vmem:[%s3107_s27] ss:$0 sm:$0xff] }
  0x42   : > { %678 = vadd.xlane.f32.xlu1 %v677_v9  ;;  %790 = vmatpush.bf16.msra.mxu1 %v2146_v23 }
  0x46   : > { %791 = vmatpush.bf16.msra.mxu1 %v2138_v28 }
  0x4a   : > { %802 = vmatpush.bf16.msrb.mxu1 %v2166_v37 }
  0x4e   : > { %803 = vmatpush.bf16.msrb.mxu1 %v2158_v41 }
  0x52   : > { %804 = vmatpush.bf16.msrb.mxu1 %v2150_v48 }
  0x56   : > { %805 = vmatpush.bf16.msrb.mxu1 %v2142_v53 }
  0xab   : > { %v668_v13 = vpop.xlane.xlu0 %667 }
  0xac   : > { %v680_v16 = vmul.f32 0.015625, %v668_v13  ;;  %v735_v13 = vld [vmem:[%s2691_s20] sm:$0x3]  ;;  %s2555_s20 = smov 80  }
  0xad   : > { %v676_v18 = vpop.xlane.xlu1 %675  ;;  %v737_v14 = vperm.slane %v735_v13, 0  ;;  %v738_v28 = vperm.slane %v735_v13, 1 }
  0xae   : > { %v684_v19 = vmul.f32 %v680_v16, %v680_v16  ;;  %v682_v20 = vmul.f32 0.015625, %v676_v18  ;;  %v712_v61 = vsub.f32 %v2739_v2, %v680_v16 }
  0xb0   : > { %v686_v26 = vsub.f32 %v682_v20, %v684_v19 }
  0xb2   : > { %v688_v27 = vmax.f32 %v686_v26, 0.0 }
  0xb3   : > { %v671_v29 = vpop.xlane.xlu0 %670 }
  0xb4   : > { %v690_v30 = vadd.f32 1e-06, %v688_v27  ;;  %v681_v31 = vmul.f32 0.015625, %v671_v29 }
  0xb5   : > { %v679_v32 = vpop.xlane.xlu1 %678 }
  0xb6   : > { %2456 = vrsqrt.f32 %v690_v30  ;;  %v685_v33 = vmul.f32 %v681_v31, %v681_v31  ;;  %v683_v34 = vmul.f32 0.015625, %v679_v32  ;;  %vm698_vm3 = vweird.f32 %v690_v30 }
  0xb7   : > { %v713_v3 = vsub.f32 %v2745_v5, %v681_v31 }
  0xb8   : > { %v687_v38 = vsub.f32 %v683_v34, %v685_v33 }
  0xba   : > { %v689_v42 = vmax.f32 %v687_v38, 0.0 }
  0xbc   : > { %v2457_v45 = vpop.eup %2456  ;;  %v691_v47 = vadd.f32 1e-06, %v689_v42 }
  0xbd   : > { %v693_v46 = vmul.f32 %v2457_v45, %v690_v30  ;;  %vm699_vm2 = vweird.f32 %v2457_v45 }
  0xbe   : > { %2458 = vrsqrt.f32 %v691_v47  ;;  %vm700_vm4 = vmor %vm698_vm3, %vm699_vm2  ;;  %vm708_vm6 = vweird.f32 %v691_v47 }
  0xbf   : > { %v694_v49 = vmul.f32 %v2457_v45, %v693_v46 }
  0xc1   : > { %v695_v52 = vmul.f32 0.5, %v694_v49 }
  0xc3   : > { %v696_v54 = vsub.f32 1.5, %v695_v52 }
  0xc4   : > { %v2459_v55 = vpop.eup %2458 }
  0xc5   : > { %v697_v56 = vmul.f32 %v2457_v45, %v696_v54  ;;  %v703_v57 = vmul.f32 %v2459_v55, %v691_v47  ;;  %vm709_vm5 = vweird.f32 %v2459_v55 }
  0xc6   : > { %vm710_vm7 = vmor %vm708_vm6, %vm709_vm5 }
  0xc7   : > { %v704_v58 = vmul.f32 %v2459_v55, %v703_v57  ;;  %v701_v60 = vsel %vm700_vm4, %v2457_v45, %v697_v56 }
  0xc8   : > { %v714_v63 = vmul.f32 %v712_v61, %v701_v60 }
  0xc9   : > { %v705_v59 = vmul.f32 0.5, %v704_v58 }
  0xca   : > { %v719_v7 = vmul.f32 %v2450_v0, %v714_v63 }
  0xcb   : > { %v706_v62 = vsub.f32 1.5, %v705_v59 }
  0xcc   : > { %v724_v10 = vadd.f32 %v2451_v8, %v719_v7 }
  0xcd   : > { %v707_v1 = vmul.f32 %v2459_v55, %v706_v62 }
  0xcf   : > { %v711_v4 = vsel %vm710_vm7, %v2459_v55, %v707_v1 }
  0xd0   : > { %v715_v6 = vmul.f32 %v713_v3, %v711_v4 }
  0xd2   : > { %v720_v9 = vmul.f32 %v2450_v0, %v715_v6 }
  0xd4   : > { %v725_v11 = vadd.f32 %v2451_v8, %v720_v9 }
  0xd6   : > { %v726_v12 = vpack.c.bf16 %v725_v11, %v724_v10 }
  0xd8   : > { %2167 = vmatmul.msk.bf16.vlgmr.msra.gmra.mxu1 %vm665_vm1, %v726_v12 }
  0xe8   : > { %2168 = vmatmul.msk.bf16.vlgmr.msrb.gmra.mxu1 %vm665_vm1, %v726_v12 }
 0x155   : > { %v793_v15 = vpop.f32.mrf.mxu1 }
 0x156   : > { %v794_v16 = vadd.f32 %v793_v15, %v737_v14 }
 0x158   : > { %v862_v17 = vpack.c.bf16 %v794_v16, %v794_v16  ;;  %v812_v25 = vmul.f32 0.25, %v794_v16 }
 0x15a   : > { %v899_v18 = vunpack.c.l.b16 %v862_v17  ;;  %v834_v63 = vpack.c.bf16 %v812_v25, %v812_v25 }
 0x15c   : > { %v900_v19 = vpack.c.b16 %v899_v18, %v899_v18 }
 0x15d   : > { %v795_v20 = vpop.f32.mrf.mxu1 }
 0x15e   : > { %v796_v21 = vadd.f32 %v795_v20, %v737_v14  ;;  %901 = vrot.lane.b32.xlu1 %v900_v19, %s2552_s3 }
 0x160   : > { %v2400_v22 = vpack.i.bf16 %v796_v21, %v794_v16  ;;  %v813_v23 = vmul.f32 0.25, %v796_v21  ;;  %v863_v27 = vpack.c.bf16 %v796_v21, %v796_v21 }
 0x162   : > { %2401 = vrot.lane.b32.xlu0 %v2400_v22, %s2553_s24  ;;  %2391 = vrot.lane.b32.xlu2 %v2400_v22, %s2554_s1  ;;  %v2405_v26 = vpack.i.bf16 %v813_v23, %v812_v25  ;;  %v924_v29 = vunpack.c.l.b16 %v863_v27  ;;  %v835_v57 = vpack.c.bf16 %v813_v23, %v813_v23 }
 0x164   : > { %v925_v33 = vpack.c.b16 %v924_v29, %v924_v29 }
 0x165   : > { %v807_v24 = vpop.f32.mrf.mxu1 }
 0x166   : > { %v2789_v31 = vadd.f32 %v807_v24, %v738_v28 }
 0x168   : > { %v890_v19 = vpack.c.bf16 %v2789_v31, %v2789_v31 }
 0x16a   : > { %2396 = vrot.lane.b32.xlu2 %v2400_v22, %s2555_s20  ;;  %2406 = vrot.lane.b32.xlu0 %v2405_v26, %s2554_s1  ;;  %v1204_v24 = vsel %vm1202_vm9, %v890_v19, 0 }
 0x16d   : > { %v809_v30 = vpop.f32.mrf.mxu1 }
 0x16e   : > { %v2791_v32 = vadd.f32 %v809_v30, %v738_v28 }
 0x170   : > { %v2795_v34 = vpack.i.bf16 %v2791_v32, %v2789_v31  ;;  %v891_v31 = vpack.c.bf16 %v2791_v32, %v2791_v32 }
 0x172   : > { %926 = vrot.lane.b32.xlu2 %v925_v33, %s2552_s3  ;;  %2411 = vrot.lane.b32.xlu0 %v2405_v26, %s2555_s20 }
 0x17a   : > { %2416 = vrot.lane.b32.xlu0 %v2405_v26, %s2553_s24 }
 0x1bc   : > { %v2392_v35 = vpop.permute.xlu2 %2391 }
 0x1bd   : > { %v2393_v36 = vunpack.i.l.bf16 %v2392_v35  ;;  %v2394_v37 = vunpack.i.h.bf16 %v2392_v35 }
 0x1bf   : > { %v864_v38 = vpack.c.bf16 %v2393_v36, %v2393_v36  ;;  %v865_v40 = vpack.c.bf16 %v2394_v37, %v2394_v37  ;;  %v1223_v36 = vsel %vm1202_vm9, %v891_v31, 0 }
 0x1c1   : > { %v948_v39 = vunpack.c.l.b16 %v864_v38  ;;  %v972_v44 = vunpack.c.l.b16 %v865_v40  ;;  %v1091_v38 = vlaneseq }
 0x1c3   : > { %v949_v41 = vpack.c.b16 %v948_v39, %v948_v39  ;;  %v973_v48 = vpack.c.b16 %v972_v44, %v972_v44 }
 0x1c4   : > { %v2397_v42 = vpop.permute.xlu2 %2396 }
 0x1c5   : > { %v2399_v43 = vunpack.i.h.bf16 %v2397_v42  ;;  %950 = vrot.lane.b32.xlu2 %v949_v41, %s2552_s3  ;;  %v2398_v46 = vunpack.i.l.bf16 %v2397_v42  ;;  %v1092_v41 = vand.u32 127, %v1091_v38 }
 0x1c7   : > { %v869_v45 = vpack.c.bf16 %v2399_v43, %v2399_v43  ;;  %v868_v50 = vpack.c.bf16 %v2398_v46, %v2398_v46  ;;  %vm1093_vm10 = vcmp.lt.s32.totalorder %v1092_v41, 5 }
 0x1c9   : > { %v1068_v47 = vunpack.c.l.b16 %v869_v45  ;;  %v1044_v53 = vunpack.c.l.b16 %v868_v50 }
 0x1cb   : > { %v1069_v49 = vpack.c.b16 %v1068_v47, %v1068_v47  ;;  %v1045_v56 = vpack.c.b16 %v1044_v53, %v1044_v53 }
 0x1cc   : > { %v927_v51 = vpop.permute.xlu2 %926 }
 0x1cd   : > { %974 = vrot.lane.b32.xlu2 %v973_v48, %s2552_s3  ;;  %1070 = vrot.lane.b32.xlu1 %v1069_v49, %s2552_s3  ;;  %v932_v52 = vsel %vm903_vm8, %v927_v51, 0 }
 0x1ce   : > { %941 = vmatpush.bf16.xpose.msra.mxu3 %v932_v52 }
 0x1d0   : > { %v902_v54 = vpop.permute.xlu1 %901 }
 0x1d1   : > { %v908_v55 = vsel %vm903_vm8, %v902_v54, 0 }
 0x1d2   : > { %917 = vmatpush.bf16.xpose.msra.mxu2 %v908_v55 }
 0x1d4   : > { %v2402_v58 = vpop.permute.xlu0 %2401 }
 0x1d5   : > { %v2404_v59 = vunpack.i.h.bf16 %v2402_v58  ;;  %v2403_v60 = vunpack.i.l.bf16 %v2402_v58  ;;  %2170 = vmatmul.msk.bf16.vlgmr.msra.gmra.mxu3 %vm903_vm8, %v835_v57  ;;  %1046 = vrot.lane.b32.xlu2 %v1045_v56, %s2552_s3 }
 0x1d7   : > { %v867_v61 = vpack.c.bf16 %v2404_v59, %v2404_v59  ;;  %v866_v62 = vpack.c.bf16 %v2403_v60, %v2403_v60 }
 0x1d9   : > { %v1020_v0 = vunpack.c.l.b16 %v867_v61  ;;  %v996_v1 = vunpack.c.l.b16 %v866_v62  ;;  %2169 = vmatmul.msk.bf16.vlgmr.msra.gmra.mxu2 %vm903_vm8, %v834_v63 }
 0x1db   : > { %v1021_v3 = vpack.c.b16 %v1020_v0, %v1020_v0  ;;  %v997_v4 = vpack.c.b16 %v996_v1, %v996_v1 }
 0x1dc   : > { %v2407_v6 = vpop.permute.xlu0 %2406 }
 0x1dd   : > { %998 = vrot.lane.b32.xlu2 %v997_v4, %s2552_s3  ;;  %1022 = vrot.lane.b32.xlu1 %v1021_v3, %s2552_s3  ;;  %v2408_v9 = vunpack.i.l.bf16 %v2407_v6  ;;  %v2409_v13 = vunpack.i.h.bf16 %v2407_v6 }
 0x1df   : > { %v836_v10 = vpack.c.bf16 %v2408_v9, %v2408_v9  ;;  %v837_v15 = vpack.c.bf16 %v2409_v13, %v2409_v13 }
 0x1e4   : > { %v2412_v14 = vpop.permute.xlu0 %2411 }
 0x1e5   : > { %v2413_v18 = vunpack.i.l.bf16 %v2412_v14  ;;  %v2414_v29 = vunpack.i.h.bf16 %v2412_v14 }
 0x1e7   : > { %v840_v20 = vpack.c.bf16 %v2413_v18, %v2413_v18  ;;  %v841_v30 = vpack.c.bf16 %v2414_v29, %v2414_v29 }
 0x1ec   : > { %v2417_v21 = vpop.permute.xlu0 %2416 }
 0x1ed   : > { %v2418_v25 = vunpack.i.l.bf16 %v2417_v21  ;;  %v2419_v37 = vunpack.i.h.bf16 %v2417_v21 }
 0x1ef   : > { %v838_v26 = vpack.c.bf16 %v2418_v25, %v2418_v25  ;;  %v839_v39 = vpack.c.bf16 %v2419_v37, %v2419_v37 }
 0x21f   : > { %v951_v7 = vpop.permute.xlu2 %950 }
 0x220   : > { %v956_v8 = vsel %vm903_vm8, %v951_v7, 0 }
 0x221   : > { %965 = vmatpush.bf16.xpose.msrb.mxu2 %v956_v8 }
 0x227   : > { %v975_v11 = vpop.permute.xlu2 %974 }
 0x228   : > { %2171 = vmatmul.msk.bf16.vlgmr.msrb.gmra.mxu2 %vm903_vm8, %v836_v10  ;;  %v980_v12 = vsel %vm903_vm8, %v975_v11, 0 }
 0x229   : > { %989 = vmatpush.bf16.xpose.msrb.mxu3 %v980_v12 }
 0x22f   : > { %v1047_v16 = vpop.permute.xlu2 %1046 }
 0x230   : > { %v1052_v17 = vsel %vm903_vm8, %v1047_v16, 0  ;;  %2172 = vmatmul.msk.bf16.vlgmr.msrb.gmra.mxu3 %vm903_vm8, %v837_v15 }
 0x231   : > { %1061 = vmatpush.bf16.xpose.msra.mxu2 %v1052_v17 }
 0x237   : > { %v999_v22 = vpop.permute.xlu2 %998 }
 0x238   : > { %2175 = vmatmul.msk.bf16.vlgmr.msra.gmra.mxu2 %vm903_vm8, %v840_v20  ;;  %v1004_v23 = vsel %vm903_vm8, %v999_v22, 0 }
 0x239   : > { %1013 = vmatpush.bf16.xpose.msra.mxu0 %v1004_v23 }
 0x23f   : > { %v1071_v27 = vpop.permute.xlu1 %1070 }
 0x240   : > { %v1076_v28 = vsel %vm903_vm8, %v1071_v27, 0  ;;  %2173 = vmatmul.msk.bf16.vlgmr.msra.gmra.mxu0 %vm903_vm8, %v838_v26 }
 0x241   : > { %1213 = vmatpush.bf16.msrb.mxu0 %v1204_v24  ;;  %1085 = vmatpush.bf16.xpose.msra.mxu3 %v1076_v28 }
 0x248   : > { %2176 = vmatmul.msk.bf16.vlgmr.msra.gmra.mxu3 %vm903_vm8, %v841_v30 }
 0x24f   : > { %v1023_v33 = vpop.permute.xlu1 %1022 }
 0x250   : > { %v1028_v35 = vsel %vm903_vm8, %v1023_v33, 0 }
 0x251   : > { %1037 = vmatpush.bf16.xpose.msra.mxu1 %v1028_v35 }
 0x258   : > { %v943_v40 = vpop.f32.mrf.mxu3  ;;  %2174 = vmatmul.msk.bf16.vlgmr.msra.gmra.mxu1 %vm903_vm8, %v839_v39 }
 0x259   : > { %1232 = vmatpush.bf16.msrb.mxu1 %v1223_v36  ;;  %v1095_v49 = vsel %vm1093_vm10, %v943_v40, -1e+30 }
 0x25a   : > { %v1106_v52 = vsel %vm1102_vm11, %v1095_v49, -inf }
 0x25c   : > { %v919_v42 = vpop.f32.mrf.mxu2 }
 0x25d   : > { %v1094_v43 = vsel %vm1093_vm10, %v919_v42, -1e+30 }
 0x25e   : > { %v1103_v32 = vsel %vm1102_vm11, %v1094_v43, -inf }
 0x25f   : > { %1104 = vmax.xlane.f32.xlu0 %v1103_v32 }
 0x260   : > { %v945_v44 = vpop.f32.mrf.mxu3 }
 0x264   : > { %v921_v45 = vpop.f32.mrf.mxu2 }
 0x2ab   : > { %v967_v46 = vpop.f32.mrf.mxu2 }
 0x2ac   : > { %v1096_v47 = vsel %vm1093_vm10, %v967_v46, -1e+30 }
 0x2ad   : > { %v1109_v48 = vsel %vm1102_vm11, %v1096_v47, -inf }
 0x2ae   : > { %1110 = vmax.xlane.f32.xlu2 %v1109_v48 }
 0x2b3   : > { %v969_v50 = vpop.f32.mrf.mxu2  ;;  %v991_v51 = vpop.f32.mrf.mxu3 }
 0x2b4   : > { %v1097_v6 = vsel %vm1093_vm10, %v991_v51, -1e+30 }
 0x2b5   : > { %v1112_v8 = vsel %vm1102_vm11, %v1097_v6, -inf }
 0x2b6   : > { %1107 = vmax.xlane.f32.xlu2 %v1106_v52 }
 0x2bb   : > { %v993_v53 = vpop.f32.mrf.mxu3  ;;  %v1063_v54 = vpop.f32.mrf.mxu2 }
 0x2bc   : > { %v1100_v11 = vsel %vm1093_vm10, %v1063_v54, -1e+30 }
 0x2bd   : > { %v1015_v55 = vpop.f32.mrf.mxu0  ;;  %v1121_v12 = vsel %vm1102_vm11, %v1100_v11, -inf }
 0x2be   : > { %v1098_v56 = vsel %vm1093_vm10, %v1015_v55, -1e+30 }
 0x2bf   : > { %v1115_v57 = vsel %vm1102_vm11, %v1098_v56, -inf }
 0x2c0   : > { %1116 = vmax.xlane.f32.xlu2 %v1115_v57 }
 0x2c3   : > { %v1065_v58 = vpop.f32.mrf.mxu2 }
 0x2c5   : > { %v1017_v59 = vpop.f32.mrf.mxu0 }
 0x2cb   : > { %v1087_v60 = vpop.f32.mrf.mxu3 }
 0x2cc   : > { %v1101_v24 = vsel %vm1093_vm10, %v1087_v60, -1e+30 }
 0x2cd   : > { %v1124_v25 = vsel %vm1102_vm11, %v1101_v24, -inf }
 0x2d2   : > { %v1105_v61 = vpop.xlane.xlu0 %1104 }
 0x2d3   : > { %v1089_v62 = vpop.f32.mrf.mxu3  ;;  %v1127_v0 = vsub.f32 %v1094_v43, %v1105_v61 }
 0x2d5   : > { %v1039_v63 = vpop.f32.mrf.mxu1  ;;  %v1135_v4 = vmul.f32 1.442695, %v1127_v0 }
 0x2d6   : > { %v1099_v1 = vsel %vm1093_vm10, %v1039_v63, -1e+30 }
 0x2d7   : > { %v1118_v3 = vsel %vm1102_vm11, %v1099_v1, -inf  ;;  %2460 = vpow2.f32 %v1135_v4 }
 0x2d8   : > { %1119 = vmax.xlane.f32.xlu1 %v1118_v3 }
 0x2dd   : > { %v1041_v7 = vpop.f32.mrf.mxu1  ;;  %v2461_v9 = vpop.eup %2460 }
 0x2de   : > { %v1151_v10 = vsel %vm1102_vm11, %v2461_v9, 0.0 }
 0x2e0   : > { %1113 = vmax.xlane.f32.xlu1 %v1112_v8 }
 0x2e8   : > { %1152 = vadd.xlane.f32.xlu1 %v1151_v10 }
 0x2f0   : > { %1122 = vmax.xlane.f32.xlu1 %v1121_v12 }
 0x321   : > { %v1111_v13 = vpop.xlane.xlu2 %1110 }
 0x322   : > { %v1129_v19 = vsub.f32 %v1096_v47, %v1111_v13 }
 0x324   : > { %v1139_v23 = vmul.f32 1.442695, %v1129_v19 }
 0x329   : > { %v1108_v14 = vpop.xlane.xlu2 %1107 }
 0x32a   : > { %v1128_v15 = vsub.f32 %v1095_v49, %v1108_v14 }
 0x32c   : > { %v1137_v16 = vmul.f32 1.442695, %v1128_v15 }
 0x32e   : > { %2462 = vpow2.f32 %v1137_v16 }
 0x333   : > { %v1117_v17 = vpop.xlane.xlu2 %1116 }
 0x334   : > { %v2463_v18 = vpop.eup %2462  ;;  %v1131_v20 = vsub.f32 %v1098_v56, %v1117_v17 }
 0x335   : > { %v1154_v21 = vsel %vm1102_vm11, %v2463_v18, 0.0 }
 0x336   : > { %v1143_v22 = vmul.f32 1.442695, %v1131_v20  ;;  %1155 = vadd.xlane.f32.xlu0 %v1154_v21 }
 0x338   : > { %2464 = vpow2.f32 %v1143_v22 }
 0x339   : > { %2466 = vpow2.f32 %v1139_v23 }
 0x33e   : > { %v2846_v26 = vpop.eup %2464  ;;  %1125 = vmax.xlane.f32.xlu0 %v1124_v25 }
 0x33f   : > { %v1163_v27 = vsel %vm1102_vm11, %v2846_v26, 0.0  ;;  %v2467_v28 = vpop.eup %2466 }
 0x340   : > { %1164 = vadd.xlane.f32.xlu1 %v1163_v27  ;;  %v1157_v29 = vsel %vm1102_vm11, %v2467_v28, 0.0 }
 0x346   : > { %1158 = vadd.xlane.f32.xlu0 %v1157_v29 }
 0x34b   : > { %v1120_v30 = vpop.xlane.xlu1 %1119 }
 0x34c   : > { %v1132_v31 = vsub.f32 %v1099_v1, %v1120_v30 }
 0x34e   : > { %v1145_v33 = vmul.f32 1.442695, %v1132_v31 }
 0x350   : > { %2468 = vpow2.f32 %v1145_v33 }
 0x353   : > { %v1114_v35 = vpop.xlane.xlu1 %1113 }
 0x354   : > { %v1130_v36 = vsub.f32 %v1097_v6, %v1114_v35 }
 0x356   : > { %v2851_v37 = vpop.eup %2468  ;;  %v1141_v38 = vmul.f32 1.442695, %v1130_v36 }
 0x357   : > { %v1166_v39 = vsel %vm1102_vm11, %v2851_v37, 0.0 }
 0x358   : > { %2470 = vpow2.f32 %v1141_v38  ;;  %1167 = vadd.xlane.f32.xlu0 %v1166_v39 }
 0x35b   : > { %v1153_v40 = vpop.xlane.xlu1 %1152 }
 0x35c   : > { %2472 = vrcp.f32 %v1153_v40 }
 0x35e   : > { %v2471_v41 = vpop.eup %2470 }
 0x35f   : > { %v1160_v42 = vsel %vm1102_vm11, %v2471_v41, 0.0 }
 0x360   : > { %1161 = vadd.xlane.f32.xlu2 %v1160_v42 }
 0x362   : > { %v2473_v43 = vpop.eup %2472 }
 0x363   : > { %v1183_v32 = vmul.f32 %v2473_v43, %v2461_v9  ;;  %v1123_v44 = vpop.xlane.xlu1 %1122 }
 0x364   : > { %v1133_v45 = vsub.f32 %v1100_v11, %v1123_v44 }
 0x365   : > { %v1191_v46 = vpack.c.bf16 %v1183_v32, %v1183_v32 }
 0x366   : > { %v1147_v47 = vmul.f32 1.442695, %v1133_v45 }
 0x367   : > { %2177 = vmatmul.msk.bf16.vlgmr.msrb.gmra.mxu0 %vm1102_vm11, %v1191_v46 }
 0x368   : > { %2474 = vpow2.f32 %v1147_v47 }
 0x36e   : > { %v2475_v48 = vpop.eup %2474 }
 0x36f   : > { %v1169_v49 = vsel %vm1102_vm11, %v2475_v48, 0.0 }
 0x370   : > { %1170 = vadd.xlane.f32.xlu1 %v1169_v49 }
 0x378   : > { %2421 = vrot.lane.b32.xlu2 %v2795_v34, %s2554_s1 }
 0x389   : > { %2426 = vrot.lane.b32.xlu1 %v2795_v34, %s2555_s20 }
 0x3a9   : > { %v1156_v50 = vpop.xlane.xlu0 %1155 }
 0x3aa   : > { %2476 = vrcp.f32 %v1156_v50 }
 0x3b0   : > { %v2477_v51 = vpop.eup %2476 }
 0x3b1   : > { %v1184_v52 = vmul.f32 %v2477_v51, %v2463_v18  ;;  %v1126_v53 = vpop.xlane.xlu0 %1125 }
 0x3b2   : > { %v1134_v54 = vsub.f32 %v1101_v24, %v1126_v53 }
 0x3b3   : > { %v1192_v55 = vpack.c.bf16 %v1184_v52, %v1184_v52  ;;  %v1165_v12 = vpop.xlane.xlu1 %1164 }
 0x3b4   : > { %v1149_v56 = vmul.f32 1.442695, %v1134_v54 }
 0x3b5   : > { %2178 = vmatmul.msk.bf16.vlgmr.msrb.gmra.mxu1 %vm1102_vm11, %v1192_v55 }
 0x3b6   : > { %2478 = vpow2.f32 %v1149_v56 }
 0x3b9   : > { %v1159_v59 = vpop.xlane.xlu0 %1158 }
 0x3ba   : > { %2480 = vrcp.f32 %v1159_v59 }
 0x3bc   : > { %v2479_v57 = vpop.eup %2478 }
 0x3bd   : > { %v1172_v58 = vsel %vm1102_vm11, %v2479_v57, 0.0 }
 0x3be   : > { %1173 = vadd.xlane.f32.xlu0 %v1172_v58 }
 0x3c0   : > { %v2481_v61 = vpop.eup %2480 }
 0x3c1   : > { %v1185_v3 = vmul.f32 %v2481_v61, %v2467_v28  ;;  %v2318_v61 = vld [vmem:[%s2696_s22 + $0x18] sm:$0xff] }
 0x3c3   : > { %v1193_v10 = vpack.c.bf16 %v1185_v3, %v1185_v3 }
 0x3cb   : > { %v1168_v25 = vpop.xlane.xlu0 %1167 }
 0x3d2   : > { %2431 = vrot.lane.b32.xlu0 %v2795_v34, %s2553_s24 }
 0x3d3   : > { %v1162_v60 = vpop.xlane.xlu2 %1161 }
 0x3d4   : > { %2482 = vrcp.f32 %v1162_v60 }
 0x3da   : > { %v2483_v62 = vpop.eup %2482 }
 0x3db   : > { %v2422_v63 = vpop.permute.xlu2 %2421  ;;  %v1186_v4 = vmul.f32 %v2483_v62, %v2471_v41  ;;  %v2317_v62 = vld [vmem:[%s2696_s22 + $0x10] sm:$0xff] }
 0x3dc   : > { %v2424_v0 = vunpack.i.h.bf16 %v2422_v63  ;;  %v2423_v1 = vunpack.i.l.bf16 %v2422_v63  ;;  %v2316_v63 = vld [vmem:[%s2696_s22 + $0x8] sm:$0xff] }
 0x3dd   : > { %v1194_v34 = vpack.c.bf16 %v1186_v4, %v1186_v4 }
 0x3de   : > { %v893_v6 = vpack.c.bf16 %v2424_v0, %v2424_v0  ;;  %v892_v7 = vpack.c.bf16 %v2423_v1, %v2423_v1  ;;  %v2315_v0 = vld [vmem:[%s2696_s22] sm:$0xff] }
 0x3e0   : > { %v1242_v8 = vsel %vm1202_vm9, %v892_v7, 0  ;;  %v1261_v9 = vsel %vm1202_vm9, %v893_v6, 0 }
 0x3e1   : > { %1251 = vmatpush.bf16.msrb.mxu2 %v1242_v8  ;;  %1270 = vmatpush.bf16.msrb.mxu3 %v1261_v9 }
 0x3e3   : > { %v1171_v14 = vpop.xlane.xlu1 %1170 }
 0x3e4   : > { %v2868_v11 = vpop.f32.mrf.mxu0  ;;  %2179 = vmatmul.msk.bf16.vlgmr.msrb.gmra.mxu2 %vm1102_vm11, %v1193_v10  ;;  %2180 = vmatmul.msk.bf16.vlgmr.msrb.gmra.mxu3 %vm1102_vm11, %v1194_v34  ;;  %2484 = vrcp.f32 %v1171_v14 }
 0x3ea   : > { %v2485_v15 = vpop.eup %2484 }
 0x3eb   : > { %v1189_v19 = vmul.f32 %v2485_v15, %v2475_v48 }
 0x3ec   : > { %v1217_v13 = vpop.f32.mrf.mxu0 }
 0x3ed   : > { %v1197_v24 = vpack.c.bf16 %v1189_v19, %v1189_v19  ;;  %v2452_v19 = vld [vmem:[%s3108_s29] ss:$0 sm:$0xff] }
 0x3fb   : > { %v2427_v16 = vpop.permute.xlu1 %2426 }
 0x3fc   : > { %v2429_v17 = vunpack.i.h.bf16 %v2427_v16  ;;  %v2428_v18 = vunpack.i.l.bf16 %v2427_v16 }
 0x3fe   : > { %v897_v20 = vpack.c.bf16 %v2429_v17, %v2429_v17  ;;  %v896_v21 = vpack.c.bf16 %v2428_v18, %v2428_v18 }
 0x400   : > { %v1318_v22 = vsel %vm1202_vm9, %v896_v21, 0  ;;  %v1337_v23 = vsel %vm1202_vm9, %v897_v20, 0 }
 0x401   : > { %1327 = vmatpush.bf16.msra.mxu2 %v1318_v22  ;;  %1346 = vmatpush.bf16.msra.mxu3 %v1337_v23 }
 0x404   : > { %2183 = vmatmul.msk.bf16.vlgmr.msra.gmra.mxu2 %vm1102_vm11, %v1197_v24 }
 0x431   : > { %v1174_v27 = vpop.xlane.xlu0 %1173 }
 0x432   : > { %2486 = vrcp.f32 %v1174_v27  ;;  %v1234_v28 = vpop.f32.mrf.mxu1 }
 0x433   : > { %2488 = vrcp.f32 %v1165_v12 }
 0x434   : > { %2490 = vrcp.f32 %v1168_v25 }
 0x438   : > { %v2487_v29 = vpop.eup %2486 }
 0x439   : > { %v1190_v30 = vmul.f32 %v2487_v29, %v2479_v57  ;;  %v2489_v35 = vpop.eup %2488 }
 0x43a   : > { %v1236_v31 = vpop.f32.mrf.mxu1  ;;  %v2491_v36 = vpop.eup %2490  ;;  %v1187_v41 = vmul.f32 %v2489_v35, %v2846_v26  ;;  %v2325_v35 = vld [vmem:[%s2713_s4 + $0x34] sm:$0xf] }
 0x43b   : > { %v1198_v33 = vpack.c.bf16 %v1190_v30, %v1190_v30  ;;  %v1188_v42 = vmul.f32 %v2491_v36, %v2851_v37  ;;  %v2228_v31 = vld [vmem:[%s2713_s4 + $0x30] sm:$0xf] }
 0x43c   : > { %v1195_v46 = vpack.c.bf16 %v1187_v41, %v1187_v41  ;;  %v2324_v41 = vld [vmem:[%s2713_s4 + $0x24] sm:$0xf0] }
 0x43d   : > { %2184 = vmatmul.msk.bf16.vlgmr.msra.gmra.mxu3 %vm1102_vm11, %v1198_v33  ;;  %v1196_v47 = vpack.c.bf16 %v1188_v42, %v1188_v42  ;;  %v2326_v33 = vld [vmem:[%s2713_s4 + $0x34] sm:$0xf0]  ;;  %v2323_v42 = vld [vmem:[%s2713_s4 + $0x24] sm:$0xf] }
 0x43e   : > { %v2229_v36 = vor.u32 %v2326_v33, %v2228_v31 }
 0x444   : > { %v2432_v38 = vpop.permute.xlu0 %2431 }
 0x445   : > { %v2434_v39 = vunpack.i.h.bf16 %v2432_v38  ;;  %v2433_v40 = vunpack.i.l.bf16 %v2432_v38  ;;  %v2230_v38 = vld [vmem:[%s2713_s4 + $0x38] sm:$0xf0] }
 0x447   : > { %v895_v43 = vpack.c.bf16 %v2434_v39, %v2434_v39  ;;  %v894_v32 = vpack.c.bf16 %v2433_v40, %v2433_v40  ;;  %v2220_v40 = vld [vmem:[%s2713_s4 + $0x20] sm:$0xf] }
 0x449   : > { %v1280_v44 = vsel %vm1202_vm9, %v894_v32, 0  ;;  %v1299_v45 = vsel %vm1202_vm9, %v895_v43, 0  ;;  %v2221_v32 = vor.u32 %v2324_v41, %v2220_v40 }
 0x44a   : > { %1289 = vmatpush.bf16.msra.mxu0 %v1280_v44  ;;  %1308 = vmatpush.bf16.msra.mxu1 %v1299_v45  ;;  %v2222_v44 = vld [vmem:[%s2713_s4 + $0x28] sm:$0xf0] }
 0x44d   : > { %2181 = vmatmul.msk.bf16.vlgmr.msra.gmra.mxu0 %vm1102_vm11, %v1195_v46  ;;  %2182 = vmatmul.msk.bf16.vlgmr.msra.gmra.mxu1 %vm1102_vm11, %v1196_v47  ;;  %v2225_v46 = vor.u32 %v2323_v42, %v2222_v44 }
 0x44e   : > { %1428 = vmatpush.bf16.msrb.mxu0 %v2318_v61  ;;  %1564 = vmatpush.bf16.msrb.mxu1 %v2229_v36  ;;  %v1511_v36 = vld [vmem:[%s2718_s21] sm:$0x3] }
 0x44f   : > { %v1514_v41 = vperm.slane %v1511_v36, 1 }
 0x452   : > { %1429 = vmatpush.bf16.msrb.mxu0 %v2317_v62  ;;  %1565 = vmatpush.bf16.msrb.mxu1 %v2221_v32  ;;  %v2206_v62 = vld [vmem:[%s2713_s4 + $0x8] sm:$0xf0]  ;;  %v2334_v32 = vld [vmem:[%s2724_s23 + $0x38] sm:$0xff] }
 0x453   : > { %1882 = vmatpush.bf16.msrb.mxu3 %v2334_v32 }
 0x456   : > { %1430 = vmatpush.bf16.msrb.mxu0 %v2316_v63 }
 0x45a   : > { %1431 = vmatpush.bf16.msrb.mxu0 %v2315_v0 }
 0x467   : > { %v1253_v48 = vpop.f32.mrf.mxu2  ;;  %v1272_v49 = vpop.f32.mrf.mxu3 }
 0x468   : > { %v2440_v50 = vpack.i.bf16 %v1272_v49, %v1253_v48  ;;  %v2212_v49 = vld [vmem:[%s2713_s4 + $0x10] sm:$0xf] }
 0x46f   : > { %v1255_v26 = vpop.f32.mrf.mxu2  ;;  %v1274_v51 = vpop.f32.mrf.mxu3 }
 0x470   : > { %v2321_v26 = vld [vmem:[%s2713_s4 + $0x14] sm:$0xf] }
 0x487   : > { %v1329_v37 = vpop.f32.mrf.mxu2 }
 0x48f   : > { %v1331_v52 = vpop.f32.mrf.mxu2 }
 0x490   : > { %v2214_v52 = vld [vmem:[%s2713_s4 + $0x18] sm:$0xf0] }
 0x4c0   : > { %v1348_v53 = vpop.f32.mrf.mxu3 }
 0x4c1   : > { %v2445_v60 = vpack.i.bf16 %v1348_v53, %v1329_v37  ;;  %v2217_v53 = vor.u32 %v2321_v26, %v2214_v52 }
 0x4c8   : > { %v1350_v54 = vpop.f32.mrf.mxu3 }
 0x4ca   : > { %v1291_v55 = vpop.f32.mrf.mxu0  ;;  %v1310_v56 = vpop.f32.mrf.mxu1 }
 0x4cb   : > { %v2435_v57 = vpack.i.bf16 %v1310_v56, %v1291_v55  ;;  %v2204_v56 = vld [vmem:[%s2713_s4] sm:$0xf] }
 0x4cd   : > { %2436 = vrot.lane.b32.xlu2 %v2435_v57, %s2556_s17  ;;  %v2320_v57 = vld [vmem:[%s2713_s4 + $0x4] sm:$0xf0] }
 0x4ce   : > { %v2205_v61 = vor.u32 %v2320_v57, %v2204_v56 }
 0x4d2   : > { %v1293_v58 = vpop.f32.mrf.mxu0  ;;  %v1312_v59 = vpop.f32.mrf.mxu1 }
 0x4d3   : > { %v2319_v58 = vld [vmem:[%s2713_s4 + $0x4] sm:$0xf] }
 0x4d4   : > { %v2209_v0 = vor.u32 %v2319_v58, %v2206_v62  ;;  %v2341_v58 = vld [vmem:[%s2724_s23 + $0x70] sm:$0xff] }
 0x4d5   : > { %2441 = vrot.lane.b32.xlu2 %v2440_v50, %s2557_s14  ;;  %v2322_v50 = vld [vmem:[%s2713_s4 + $0x14] sm:$0xf0] }
 0x4d6   : > { %v2213_v37 = vor.u32 %v2322_v50, %v2212_v49  ;;  %v2333_v50 = vld [vmem:[%s2724_s23 + $0x30] sm:$0xff] }
 0x4d7   : > { %1883 = vmatpush.bf16.msrb.mxu3 %v2333_v50 }
 0x4d8   : > { %1566 = vmatpush.bf16.msrb.mxu1 %v2213_v37  ;;  %v2342_v37 = vld [vmem:[%s2724_s23 + $0x78] sm:$0xff] }
 0x4d9   : > { %1896 = vmatpush.bf16.msra.mxu0 %v2342_v37 }
 0x4dc   : > { %1567 = vmatpush.bf16.msrb.mxu1 %v2205_v61 }
 0x4dd   : > { %2446 = vrot.lane.b32.xlu2 %v2445_v60, %s2558_s26  ;;  %1897 = vmatpush.bf16.msra.mxu0 %v2341_v58 }
 0x527   : > { %v2437_v1 = vpop.permute.xlu2 %2436 }
 0x528   : > { %v2439_v9 = vunpack.i.h.bf16 %v2437_v1  ;;  %v2438_v10 = vunpack.i.l.bf16 %v2437_v1 }
 0x52f   : > { %v2442_v3 = vpop.permute.xlu2 %2441 }
 0x530   : > { %v2444_v4 = vunpack.i.h.bf16 %v2442_v3  ;;  %v2443_v6 = vunpack.i.l.bf16 %v2442_v3 }
 0x532   : > { %v1377_v7 = vsel %vm903_vm8, %v1234_v28, %v2444_v4  ;;  %v1376_v8 = vsel %vm903_vm8, %v2868_v11, %v2443_v6 }
 0x533   : > { %v1379_v14 = vsel %vm1378_vm12, %v1376_v8, %v2438_v10  ;;  %v1380_v15 = vsel %vm1378_vm12, %v1377_v7, %v2439_v9 }
 0x537   : > { %v2447_v34 = vpop.permute.xlu2 %2446 }
 0x538   : > { %v2449_v12 = vunpack.i.h.bf16 %v2447_v34  ;;  %v2448_v13 = vunpack.i.l.bf16 %v2447_v34 }
 0x53a   : > { %v1383_v16 = vsel %vm1381_vm13, %v1380_v15, %v2449_v12  ;;  %v1382_v17 = vsel %vm1381_vm13, %v1379_v14, %v2448_v13 }
 0x53b   : > { %v1384_v18 = vpack.c.bf16 %v1383_v16, %v1382_v17 }
 0x53d   : > { %2201 = vmatmul.msk.bf16.vlgmr.msrb.gmra.mxu0 %vm665_vm1, %v1384_v18 }
 0x5ba   : > { %v1433_v11 = vpop.f32.mrf.mxu0 }
 0x5bb   : > { %v1434_v20 = vadd.f32 %v2452_v19, %v1433_v11 }
 0x5bd   : > { %v2896_v21 = vadd.f32 %v1434_v20, %v2739_v2  ;;  %v2453_v20 = vld [vmem:[%s3109_s18] ss:$0 sm:$0xff] }
 0x5bf   : > { %v1442_v22 = vsel %vm665_vm1, %v2896_v21, 0.0  ;;  %v1448_v23 = vmul.f32 %v2896_v21, %v2896_v21 }
 0x5c0   : > { %1443 = vadd.xlane.f32.xlu0 %v1442_v22 }
 0x5c1   : > { %v1450_v24 = vsel %vm665_vm1, %v1448_v23, 0.0 }
 0x5c2   : > { %v1435_v25 = vpop.f32.mrf.mxu0  ;;  %1451 = vadd.xlane.f32.xlu2 %v1450_v24 }
 0x5c3   : > { %v1436_v27 = vadd.f32 %v2452_v19, %v1435_v25 }
 0x5c5   : > { %v2904_v28 = vadd.f32 %v1436_v27, %v2745_v5  ;;  %v2233_v5 = vor.u32 %v2325_v35, %v2230_v38  ;;  %v1513_v38 = vperm.slane %v1511_v36, 0 }
 0x5c7   : > { %v1445_v2 = vsel %vm665_vm1, %v2904_v28, 0.0  ;;  %v1449_v29 = vmul.f32 %v2904_v28, %v2904_v28  ;;  %1578 = vmatpush.bf16.msrb.mxu2 %v2233_v5 }
 0x5c8   : > { %1446 = vadd.xlane.f32.xlu1 %v1445_v2 }
 0x5c9   : > { %v1453_v30 = vsel %vm665_vm1, %v1449_v29, 0.0  ;;  %v2454_v29 = vld [vmem:[%s629_s25] ss:$0 sm:$0xff] }
 0x5ca   : > { %1454 = vadd.xlane.f32.xlu0 %v1453_v30 }
 0x5cb   : > { %1579 = vmatpush.bf16.msrb.mxu2 %v2225_v46 }
 0x5cf   : > { %1580 = vmatpush.bf16.msrb.mxu2 %v2217_v53 }
 0x5d3   : > { %1581 = vmatpush.bf16.msrb.mxu2 %v2209_v0 }
 0x633   : > { %v1444_v39 = vpop.xlane.xlu0 %1443 }
 0x634   : > { %v1456_v43 = vmul.f32 0.015625, %v1444_v39 }
 0x635   : > { %v1452_v45 = vpop.xlane.xlu2 %1451 }
 0x636   : > { %v1460_v47 = vmul.f32 %v1456_v43, %v1456_v43  ;;  %v1458_v48 = vmul.f32 0.015625, %v1452_v45  ;;  %v1488_v19 = vsub.f32 %v2896_v21, %v1456_v43 }
 0x638   : > { %v1462_v51 = vsub.f32 %v1458_v48, %v1460_v47 }
 0x63a   : > { %v1464_v54 = vmax.f32 %v1462_v51, 0.0 }
 0x63b   : > { %v1447_v55 = vpop.xlane.xlu1 %1446 }
 0x63c   : > { %v1466_v59 = vadd.f32 1e-06, %v1464_v54  ;;  %v1457_v60 = vmul.f32 0.015625, %v1447_v55  ;;  %v2332_v54 = vld [vmem:[%s2724_s23 + $0x28] sm:$0xff] }
 0x63d   : > { %v1455_v63 = vpop.xlane.xlu0 %1454  ;;  %1884 = vmatpush.bf16.msrb.mxu3 %v2332_v54 }
 0x63e   : > { %2492 = vrsqrt.f32 %v1466_v59  ;;  %v1461_v1 = vmul.f32 %v1457_v60, %v1457_v60  ;;  %v1459_v3 = vmul.f32 0.015625, %v1455_v63  ;;  %vm1474_vm15 = vweird.f32 %v1466_v59  ;;  %v2331_v63 = vld [vmem:[%s2724_s23 + $0x20] sm:$0xff] }
 0x63f   : > { %v1489_v24 = vsub.f32 %v2904_v28, %v1457_v60 }
 0x640   : > { %v1463_v4 = vsub.f32 %v1459_v3, %v1461_v1 }
 0x641   : > { %1885 = vmatpush.bf16.msrb.mxu3 %v2331_v63 }
 0x642   : > { %v1465_v6 = vmax.f32 %v1463_v4, 0.0  ;;  %v2340_v4 = vld [vmem:[%s2724_s23 + $0x68] sm:$0xff] }
 0x643   : > { %1898 = vmatpush.bf16.msra.mxu0 %v2340_v4  ;;  %v2336_v4 = vld [vmem:[%s2724_s23 + $0x48] sm:$0xff] }
 0x644   : > { %v2493_v7 = vpop.eup %2492  ;;  %v1467_v9 = vadd.f32 1e-06, %v1465_v6 }
 0x645   : > { %v1469_v8 = vmul.f32 %v2493_v7, %v1466_v59  ;;  %vm1475_vm14 = vweird.f32 %v2493_v7 }
 0x646   : > { %2494 = vrsqrt.f32 %v1467_v9  ;;  %vm1476_vm0 = vmor %vm1474_vm15, %vm1475_vm14  ;;  %vm1484_vm3 = vweird.f32 %v1467_v9 }
 0x647   : > { %v1470_v10 = vmul.f32 %v2493_v7, %v1469_v8 }
 0x649   : > { %v1471_v34 = vmul.f32 0.5, %v1470_v10 }
 0x64b   : > { %v1472_v12 = vsub.f32 1.5, %v1471_v34 }
 0x64c   : > { %v2495_v13 = vpop.eup %2494 }
 0x64d   : > { %v1473_v14 = vmul.f32 %v2493_v7, %v1472_v12  ;;  %v1479_v15 = vmul.f32 %v2495_v13, %v1467_v9  ;;  %vm1485_vm2 = vweird.f32 %v2495_v13  ;;  %v2330_v9 = vld [vmem:[%s2724_s23 + $0x18] sm:$0xff] }
 0x64e   : > { %vm1486_vm4 = vmor %vm1484_vm3, %vm1485_vm2  ;;  %1886 = vmatpush.bf16.msrb.mxu3 %v2330_v9 }
 0x64f   : > { %v1480_v16 = vmul.f32 %v2495_v13, %v1479_v15  ;;  %v1477_v17 = vsel %vm1476_vm0, %v2493_v7, %v1473_v14  ;;  %v2339_v14 = vld [vmem:[%s2724_s23 + $0x60] sm:$0xff] }
 0x650   : > { %v1490_v22 = vmul.f32 %v1488_v19, %v1477_v17  ;;  %v2329_v19 = vld [vmem:[%s2724_s23 + $0x10] sm:$0xff]  ;;  %1899 = vmatpush.bf16.msra.mxu0 %v2339_v14 }
 0x651   : > { %v1481_v18 = vmul.f32 0.5, %v1480_v16 }
 0x652   : > { %v1495_v27 = vmul.f32 %v2453_v20, %v1490_v22  ;;  %1887 = vmatpush.bf16.msrb.mxu3 %v2329_v19 }
 0x653   : > { %v1482_v11 = vsub.f32 1.5, %v1481_v18 }
 0x654   : > { %v1500_v31 = vadd.f32 %v2454_v29, %v1495_v27  ;;  %v2338_v27 = vld [vmem:[%s2724_s23 + $0x58] sm:$0xff] }
 0x655   : > { %v1483_v23 = vmul.f32 %v2495_v13, %v1482_v11  ;;  %1900 = vmatpush.bf16.msra.mxu0 %v2338_v27 }
 0x657   : > { %v1487_v25 = vsel %vm1486_vm4, %v2495_v13, %v1483_v23 }
 0x658   : > { %v1491_v2 = vmul.f32 %v1489_v24, %v1487_v25 }
 0x65a   : > { %v1496_v30 = vmul.f32 %v2453_v20, %v1491_v2 }
 0x65c   : > { %v1501_v33 = vadd.f32 %v2454_v29, %v1496_v30 }
 0x65e   : > { %v1502_v35 = vpack.c.bf16 %v1501_v33, %v1500_v31 }
 0x660   : > { %2234 = vmatmul.msk.bf16.vlgmr.msrb.gmra.mxu1 %vm665_vm1, %v1502_v35  ;;  %2235 = vmatmul.msk.bf16.vlgmr.msrb.gmra.mxu2 %vm665_vm1, %v1502_v35  ;;  %v2328_v35 = vld [vmem:[%s2724_s23 + $0x8] sm:$0xff] }
 0x661   : > { %1888 = vmatpush.bf16.msrb.mxu3 %v2328_v35 }
 0x6dd   : > { %v1569_v5 = vpop.f32.mrf.mxu1 }
 0x6de   : > { %v2942_v39 = vadd.f32 %v1569_v5, %v1513_v38 }
 0x6e0   : > { %v2945_v40 = vmul.f32 0.70710677, %v2942_v39 }
 0x6e2   : > { %v1596_v42 = vand.u32 2147483647, %v2945_v40 }
 0x6e3   : > { %v1583_v43 = vpop.f32.mrf.mxu2 }
 0x6e4   : > { %v1600_v44 = vmul.f32 0.3275911, %v1596_v42  ;;  %v2949_v45 = vadd.f32 %v1583_v43, %v1514_v41  ;;  %v1704_v10 = vsub.f32 0.0, %v1596_v42 }
 0x6e5   : > { %v1571_v46 = vpop.f32.mrf.mxu1 }
 0x6e6   : > { %v1604_v47 = vadd.f32 1.0, %v1600_v44  ;;  %v2952_v48 = vmul.f32 0.70710677, %v2949_v45  ;;  %v2954_v49 = vadd.f32 %v1571_v46, %v1513_v38  ;;  %v1708_v20 = vmul.f32 %v1704_v10, %v1596_v42  ;;  %v2337_v44 = vld [vmem:[%s2724_s23 + $0x50] sm:$0xff] }
 0x6e7   : > { %1901 = vmatpush.bf16.msra.mxu0 %v2337_v44 }
 0x6e8   : > { %2496 = vrcp.f32 %v1604_v47  ;;  %v2958_v26 = vand.u32 2147483647, %v2952_v48  ;;  %v2961_v51 = vmul.f32 0.70710677, %v2954_v49  ;;  %v1619_v6 = vand.u32 2147483648, %v1604_v47 }
 0x6e9   : > { %v1617_v8 = vand.u32 2147483647, %v1604_v47  ;;  %vm1613_vm6 = vweird.f32 %v1604_v47  ;;  %v1712_v36 = vmul.f32 1.442695, %v1708_v20 }
 0x6ea   : > { %v1601_v52 = vmul.f32 0.3275911, %v2958_v26  ;;  %v2967_v55 = vand.u32 2147483647, %v2961_v51  ;;  %v1620_v15 = vor.u32 1.1754944e-38, %v1619_v6  ;;  %v1705_v33 = vsub.f32 0.0, %v2958_v26 }
 0x6eb   : > { %v1585_v53 = vpop.f32.mrf.mxu2  ;;  %vm1618_vm8 = vcmp.eq.f32.partialorder %v1617_v8, 8.507059e+37  ;;  %1902 = vmatpush.bf16.msra.mxu0 %v2336_v4 }
 0x6ec   : > { %v2969_v56 = vadd.f32 %v1585_v53, %v1514_v41  ;;  %v2971_v57 = vadd.f32 1.0, %v1601_v52  ;;  %v1602_v60 = vmul.f32 0.3275911, %v2967_v55  ;;  %v1709_v53 = vmul.f32 %v1705_v33, %v2958_v26 }
 0x6ee   : > { %v2497_v59 = vpop.eup %2496  ;;  %v2976_v61 = vmul.f32 0.70710677, %v2969_v56  ;;  %2498 = vrcp.f32 %v2971_v57  ;;  %v2980_v0 = vadd.f32 1.0, %v1602_v60  ;;  %v1634_v25 = vand.u32 2147483648, %v2971_v57 }
 0x6ef   : > { %v1609_v62 = vmul.f32 %v2497_v59, %v1604_v47  ;;  %vm1614_vm5 = vweird.f32 %v2497_v59  ;;  %v1632_v29 = vand.u32 2147483647, %v2971_v57  ;;  %vm1628_vm10 = vweird.f32 %v2971_v57 }
 0x6f0   : > { %v2983_v3 = vand.u32 2147483647, %v2976_v61  ;;  %2500 = vrcp.f32 %v2980_v0  ;;  %vm1615_vm7 = vmor %vm1613_vm6, %vm1614_vm5  ;;  %v1635_v42 = vor.u32 1.1754944e-38, %v1634_v25  ;;  %v1647_v43 = vand.u32 2147483647, %v2980_v0 }
 0x6f1   : > { %v1610_v1 = vsub.f32 1.0, %v1609_v62  ;;  %v1649_v32 = vand.u32 2147483648, %v2980_v0  ;;  %vm1633_vm12 = vcmp.eq.f32.partialorder %v1632_v29, 8.507059e+37  ;;  %vm1643_vm14 = vweird.f32 %v2980_v0 }
 0x6f2   : > { %v1603_v34 = vmul.f32 0.3275911, %v2983_v3  ;;  %v1706_v60 = vsub.f32 0.0, %v2967_v55  ;;  %vm1648_vm0 = vcmp.eq.f32.partialorder %v1647_v43, 8.507059e+37  ;;  %v1714_v14 = vmul.f32 1.442695, %v1709_v53 }
 0x6f3   : > { %v1611_v7 = vmul.f32 %v2497_v59, %v1610_v1  ;;  %v1650_v63 = vor.u32 1.1754944e-38, %v1649_v32  ;;  %v1707_v29 = vsub.f32 0.0, %v2983_v3  ;;  %vm1728_vm6 = vcmp.ge.f32.partialorder %v2945_v40, 0.0 }
 0x6f4   : > { %v2499_v12 = vpop.eup %2498  ;;  %v2991_v17 = vadd.f32 1.0, %v1603_v34 }
 0x6f5   : > { %v1612_v13 = vadd.f32 %v2497_v59, %v1611_v7  ;;  %v1624_v16 = vmul.f32 %v2499_v12, %v2971_v57  ;;  %vm1629_vm9 = vweird.f32 %v2499_v12  ;;  %v2327_v57 = vld [vmem:[%s2724_s23] sm:$0xff] }
 0x6f6   : > { %2502 = vrcp.f32 %v2991_v17  ;;  %v2501_v23 = vpop.eup %2500  ;;  %vm1630_vm11 = vmor %vm1628_vm10, %vm1629_vm9  ;;  %1889 = vmatpush.bf16.msrb.mxu3 %v2327_v57  ;;  %v1662_v7 = vand.u32 2147483647, %v2991_v17  ;;  %v1664_v8 = vand.u32 2147483648, %v2991_v17  ;;  %vm1658_vm3 = vweird.f32 %v2991_v17 }
 0x6f7   : > { %v1616_v18 = vsel %vm1615_vm7, %v2497_v59, %v1612_v13  ;;  %v1625_v22 = vsub.f32 1.0, %v1624_v16  ;;  %v1639_v30 = vmul.f32 %v2501_v23, %v2980_v0  ;;  %vm1644_vm13 = vweird.f32 %v2501_v23  ;;  %v2335_v16 = vld [vmem:[%s2724_s23 + $0x40] sm:$0xff]  ;;  %s3110_s23 = sld [smem:[#allocation3_spill]] }
 0x6f8   : > { %v2994_v11 = vsel %vm1618_vm8, %v1620_v15, %v1616_v18  ;;  %vm1645_vm15 = vmor %vm1643_vm14, %vm1644_vm13  ;;  %2504 = vpow2.f32 %v1712_v36  ;;  %v1665_v20 = vor.u32 1.1754944e-38, %v1664_v8  ;;  %vm1663_vm5 = vcmp.eq.f32.partialorder %v1662_v7, 8.507059e+37  ;;  %1903 = vmatpush.bf16.msra.mxu0 %v2335_v16 }
 0x6f9   : > { %v1668_v24 = vmul.f32 1.0614054, %v2994_v11  ;;  %v1626_v2 = vmul.f32 %v2499_v12, %v1625_v22  ;;  %v1640_v5 = vsub.f32 1.0, %v1639_v30  ;;  %2506 = vpow2.f32 %v1714_v14 }
 0x6fa   : > { %vm1730_vm7 = vcmp.ge.f32.partialorder %v2961_v51, 0.0  ;;  %vm1729_vm8 = vcmp.ge.f32.partialorder %v2952_v48, 0.0  ;;  %vm1731_vm9 = vcmp.ge.f32.partialorder %v2976_v61, 0.0 }
 0x6fb   : > { %v1672_v31 = vadd.f32 -1.4531521, %v1668_v24  ;;  %v1627_v38 = vadd.f32 %v2499_v12, %v1626_v2  ;;  %v1641_v50 = vmul.f32 %v2501_v23, %v1640_v5 }
 0x6fc   : > { %v2503_v46 = vpop.eup %2502 }
 0x6fd   : > { %v1676_v41 = vmul.f32 %v1672_v31, %v2994_v11  ;;  %v1631_v47 = vsel %vm1630_vm11, %v2499_v12, %v1627_v38  ;;  %v1654_v54 = vmul.f32 %v2503_v46, %v2991_v17  ;;  %v1642_v59 = vadd.f32 %v2501_v23, %v1641_v50  ;;  %p2300_p9 = scmp.ne.s32.totalorder %s3110_s23, 1 }
 0x6fe   : > { %v3009_v52 = vsel %vm1633_vm12, %v1635_v42, %v1631_v47  ;;  %vm1659_vm2 = vweird.f32 %v2503_v46  ;;  %v2505_v31 = vpop.eup %2504  ;;  %v1711_v42 = vmul.f32 %v1707_v29, %v2983_v3 }
 0x6ff   : > { %v1680_v37 = vadd.f32 1.4214138, %v1676_v41  ;;  %v1669_v58 = vmul.f32 1.0614054, %v3009_v52  ;;  %v1655_v1 = vsub.f32 1.0, %v1654_v54  ;;  %v1646_v6 = vsel %vm1645_vm15, %v2501_v23, %v1642_v59  ;;  %vm1660_vm4 = vmor %vm1658_vm3, %vm1659_vm2  ;;  %v2507_v53 = vpop.eup %2506 }
 0x700   : > { %v1651_v0 = vsel %vm1648_vm0, %v1650_v63, %v1646_v6  ;;  %v1710_v23 = vmul.f32 %v1706_v60, %v2967_v55 }
 0x701   : > { %v1684_v62 = vmul.f32 %v1680_v37, %v2994_v11  ;;  %v1673_v26 = vadd.f32 -1.4531521, %v1669_v58  ;;  %v1656_v10 = vmul.f32 %v2503_v46, %v1655_v1  ;;  %v1670_v12 = vmul.f32 1.0614054, %v1651_v0 }
 0x702   : > { %v1716_v36 = vmul.f32 1.442695, %v1710_v23  ;;  %v1718_v37 = vmul.f32 1.442695, %v1711_v42 }
 0x703   : > { %v1688_v9 = vadd.f32 -0.28449672, %v1684_v62  ;;  %v1677_v34 = vmul.f32 %v1673_v26, %v3009_v52  ;;  %v1657_v15 = vadd.f32 %v2503_v46, %v1656_v10  ;;  %v1674_v19 = vadd.f32 -1.4531521, %v1670_v12 }
 0x704   : > { %2508 = vpow2.f32 %v1716_v36 }
 0x705   : > { %v1692_v13 = vmul.f32 %v1688_v9, %v2994_v11  ;;  %v1681_v18 = vadd.f32 1.4214138, %v1677_v34  ;;  %v1661_v24 = vsel %vm1660_vm4, %v2503_v46, %v1657_v15  ;;  %v1678_v27 = vmul.f32 %v1674_v19, %v1651_v0 }
 0x706   : > { %v1666_v2 = vsel %vm1663_vm5, %v1665_v20, %v1661_v24  ;;  %2510 = vpow2.f32 %v1718_v37  ;;  %v1590_v15 = vmul.f32 0.5, %v2954_v49  ;;  %v1589_v24 = vmul.f32 0.5, %v2949_v45 }
 0x707   : > { %v1696_v22 = vadd.f32 0.2548296, %v1692_v13  ;;  %v1685_v25 = vmul.f32 %v1681_v18, %v3009_v52  ;;  %v1671_v17 = vmul.f32 1.0614054, %v1666_v2  ;;  %v1682_v35 = vadd.f32 1.4214138, %v1678_v27 }
 0x709   : > { %v1700_v30 = vmul.f32 %v1696_v22, %v2994_v11  ;;  %v1689_v33 = vadd.f32 -0.28449672, %v1685_v25  ;;  %v1675_v38 = vadd.f32 -1.4531521, %v1671_v17  ;;  %v1686_v41 = vmul.f32 %v1682_v35, %v1651_v0 }
 0x70a   : > { %v2509_v63 = vpop.eup %2508 }
 0x70b   : > { %v1720_v5 = vmul.f32 %v2505_v31, %v1700_v30  ;;  %v1693_v55 = vmul.f32 %v1689_v33, %v3009_v52  ;;  %v1679_v43 = vmul.f32 %v1675_v38, %v1666_v2  ;;  %v1690_v44 = vadd.f32 -0.28449672, %v1686_v41 }
 0x70c   : > { %v2511_v9 = vpop.eup %2510 }
 0x70d   : > { %v1697_v32 = vadd.f32 0.2548296, %v1693_v55  ;;  %v1683_v46 = vadd.f32 1.4214138, %v1679_v43  ;;  %v1724_v47 = vsub.f32 1.0, %v1720_v5  ;;  %v1694_v50 = vmul.f32 %v1690_v44, %v1651_v0 }
 0x70f   : > { %v1701_v11 = vmul.f32 %v1697_v32, %v3009_v52  ;;  %v1687_v54 = vmul.f32 %v1683_v46, %v1666_v2  ;;  %v1698_v58 = vadd.f32 0.2548296, %v1694_v50  ;;  %v1732_v60 = vsub.f32 0.0, %v1724_v47 }
 0x711   : > { %v1721_v57 = vmul.f32 %v2507_v53, %v1701_v11  ;;  %v1691_v59 = vadd.f32 -0.28449672, %v1687_v54  ;;  %v1702_v62 = vmul.f32 %v1698_v58, %v1651_v0  ;;  %v1736_v6 = vsel %vm1728_vm6, %v1724_v47, %v1732_v60 }
 0x712   : > { %v1740_v34 = vadd.f32 1.0, %v1736_v6  ;;  %v1588_v0 = vmul.f32 0.5, %v2942_v39  ;;  %v1591_v39 = vmul.f32 0.5, %v2969_v56 }
 0x713   : > { %v1725_v3 = vsub.f32 1.0, %v1721_v57  ;;  %v1695_v1 = vmul.f32 %v1691_v59, %v1666_v2  ;;  %v1722_v4 = vmul.f32 %v2509_v63, %v1702_v62 }
 0x714   : > { %v1744_v18 = vmul.f32 %v1740_v34, %v1588_v0 }
 0x715   : > { %v1699_v26 = vadd.f32 0.2548296, %v1695_v1  ;;  %v1726_v7 = vsub.f32 1.0, %v1722_v4  ;;  %v1733_v52 = vsub.f32 0.0, %v1725_v3 }
 0x717   : > { %v1703_v8 = vmul.f32 %v1699_v26, %v1666_v2  ;;  %v1734_v10 = vsub.f32 0.0, %v1726_v7  ;;  %v1737_v14 = vsel %vm1729_vm8, %v1725_v3, %v1733_v52  ;;  %v2455_v2 = vld [vmem:[%s646_s0] ss:$0 sm:$0xff] }
 0x718   : > { %v1741_v22 = vadd.f32 1.0, %v1737_v14 }
 0x719   : > { %v1723_v12 = vmul.f32 %v2511_v9, %v1703_v8  ;;  %v1738_v13 = vsel %vm1730_vm7, %v1726_v7, %v1734_v10 }
 0x71a   : > { %v1742_v40 = vadd.f32 1.0, %v1738_v13  ;;  %v1745_v25 = vmul.f32 %v1741_v22, %v1589_v24 }
 0x71b   : > { %v1727_v16 = vsub.f32 1.0, %v1723_v12 }
 0x71c   : > { %v1746_v19 = vmul.f32 %v1742_v40, %v1590_v15 }
 0x71d   : > { %v1735_v20 = vsub.f32 0.0, %v1727_v16 }
 0x71e   : > { %v1748_v23 = vpack.c.bf16 %v1746_v19, %v1744_v18 }
 0x71f   : > { %v1739_v51 = vsel %vm1731_vm9, %v1727_v16, %v1735_v20 }
 0x720   : > { %v1743_v48 = vadd.f32 1.0, %v1739_v51  ;;  %1890 = vmatmul.bf16.vlgmr.msrb.gmra.mxu3 %v1748_v23 }
 0x722   : > { %v1747_v27 = vmul.f32 %v1743_v48, %v1591_v39 }
 0x724   : > { %v1749_v49 = vpack.c.bf16 %v1747_v27, %v1745_v25 }
 0x726   : > { %1904 = vmatmul.bf16.vlgmr.msra.gmra.mxu0 %v1749_v49 }
 0x7a3   : > { %v1891_v29 = vpop.f32.mrf.mxu3  ;;  %v1905_v30 = vpop.f32.mrf.mxu0 }
 0x7a4   : > { %v1892_v61 = vadd.f32 %v2455_v2, %v1891_v29 }
 0x7a6   : > { %v1906_v17 = vadd.f32 %v1905_v30, %v1892_v61 }
 0x7a8   : > { %v1910_v31 = vadd.f32 %v1906_v17, %v2896_v21 }
 0x7aa   : > { %1912 = vst.msk [vmem:[#allocation2] sm:$0xff] %vm665_vm1, %v1910_v31 }
 0x7ab   : > { %v1893_v45 = vpop.f32.mrf.mxu3  ;;  %v1907_v33 = vpop.f32.mrf.mxu0 }
 0x7ac   : > { %v1894_v56 = vadd.f32 %v2455_v2, %v1893_v45 }
 0x7ae   : > { %v1908_v35 = vadd.f32 %v1907_v33, %v1894_v56  ;;  %1917 = sbr.rel (%p2300_p9) target bundleno = 1975 (0x7b7), region = 80 }
 0x7b0   : > { %v1911_v36 = vadd.f32 %v1908_v35, %v2904_v28 }
 0x7b2   : > { %1913 = vst.msk [vmem:[#allocation2 + $0x8] sm:$0xff] %vm665_vm1, %v1911_v36 }
 0x7b3   : > { %v1920_v38 = vrot.slane %v1911_v36, 7  ;;  %vm1921_vm10 = vcmask 1041409   ;;  %vm1924_vm11 = vcmask 517120  }
 0x7b5   : > { %v1922_v5 = vsel %vm1921_vm10, %v1920_v38, %v1910_v31 }
 0x7b6   : > { %1925 = vst.msk [vmem:[%s2736_s19] sm:$0x3] %vm1924_vm11, %v1922_v5 }
 0x7b7 PF: > { %s3111_s16 = sld [smem:[#allocation6_spill]] }
 0x7b8   : > { %s3112_s25 = sld [smem:[#allocation4_spill]] }
 0x7b9   : > { %s3113_s26 = sld [smem:[#allocation5_spill]] }
 0x7ba   : > { %s3114_s27 = sld [smem:[#allocation7_spill]] }
 0x7bb   : > { %s3115_s28 = sld [smem:[#allocation8_spill]] }
 0x7bd   : > { %s23_s29 = sadd.s32 1, %s3111_s16  }
 0x7be   : > { %p20_p10 = scmp.ge.s32.totalorder %s23_s29, 10  }
 0x7c0   :  { %22 = sbr.rel (!%p20_p10) target bundleno = 6 (0x6), region = 146 }

</bundles_post_ra>
